<compile_context>
chip_gen: v7x
topology: tpu7x:2x2x1
jax: 0.10.0
libtpu: 0.0.40
codegen_flags: <defaults>
</compile_context>

<pallas_src>
import functools
import math

import jax
import jax.numpy as jnp
from jax.experimental import pallas as pl
from jax.experimental.pallas import tpu as pltpu


def _round_up(x, m):
    return ((x + m - 1) // m) * m


def _largest_tile(n_p, cap):
    """Largest multiple of 128 that divides n_p (a multiple of 128) and is <= cap."""
    q = n_p // 128
    cap_q = max(1, cap // 128)
    best = 1
    for d in range(1, int(math.isqrt(q)) + 1):
        if q % d == 0:
            lo, hi = d, q // d
            if lo <= cap_q and lo > best:
                best = lo
            if hi <= cap_q and hi > best:
                best = hi
    return best * 128


def _pad_to(a, shape):
    pads = [(0, t - s) for s, t in zip(a.shape, shape)]
    if any(p for _, p in pads):
        a = jnp.pad(a, pads)
    return a


def _vmem_limit_bytes():
    """Half of physical VMEM, capped at 64 MiB (v5e/v6e -> 64 MiB, v7x -> 32 MiB)."""
    cap = 128 * 1024 * 1024
    try:
        info = pltpu.get_tpu_info()
        cap = int(getattr(info, "vmem_capacity_bytes", cap)) or cap
    except Exception:
        pass
    return min(64 * 1024 * 1024, cap // 2)


# ---------------------------------------------------------------------------
# Kernels
# ---------------------------------------------------------------------------
def _support_kernel(x_ref, w_ref, s_ref, acc_ref):
    # support = x @ W: bf16 MXU operands, f32 accumulation, k-tiled over f_in.
    k = pl.program_id(1)
    prod = jnp.dot(x_ref[...], w_ref[...], preferred_element_type=jnp.float32)

    @pl.when(k == 0)
    def _():
        acc_ref[...] = prod            # first k step writes (no zero-fill)

    @pl.when(k > 0)
    def _():
        acc_ref[...] += prod

    @pl.when(k == pl.num_programs(1) - 1)
    def _():
        s_ref[...] = acc_ref[...].astype(s_ref.dtype)


def _adj_matmul_kernel(adj_ref, s_ref, b_ref, o_ref, acc_ref, *, tk,
                       support_resident):
    k = pl.program_id(1)

    a = adj_ref[...]
    if a.dtype != jnp.bfloat16:        # fast path: adj already bf16 upstream
        a = a.astype(jnp.bfloat16)

    if support_resident:
        # Whole support lives in VMEM (constant index_map); slice the K-chunk.
        start = pl.multiple_of(k * tk, 128)
        s = s_ref[pl.ds(start, tk), :]
    else:
        s = s_ref[...]

    prod = jnp.dot(a, s, preferred_element_type=jnp.float32)

    @pl.when(k == 0)
    def _():
        acc_ref[...] = prod            # first k step writes (no zero-fill)

    @pl.when(k > 0)
    def _():
        acc_ref[...] += prod

    @pl.when(k == pl.num_programs(1) - 1)
    def _():
        # Bias add gated to the last K step; epilogue stays in f32.
        o_ref[...] = (acc_ref[...] + b_ref[...]).astype(o_ref.dtype)


# ---------------------------------------------------------------------------
# Wrapper
# ---------------------------------------------------------------------------
def graph_convolution_layer(x, adj, weight, bias=None):
    """Pallas GCN layer: adj @ (x @ weight) (+ bias), f32 output.

    For best pass-2 bandwidth pass `adj` already converted to bf16 (do it once
    where the adjacency is densified / row-normalized); f32 adj also works and
    is cast per tile in-kernel.
    """
    n, f_in = x.shape
    f_in_w, f_out = weight.shape
    assert f_in == f_in_w
    assert adj.shape == (n, n)

    vmem_limit = _vmem_limit_bytes()

    # Padded, lane-dense shapes.
    n_p = _round_up(n, 128)
    f_in_p = _round_up(f_in, 128)
    f_out_p = _round_up(f_out, 128)

    # Pass-2 tiles: contraction tile up to 1024; row tile up to 1024, but kept
    # <=512 on mid-size graphs so the "parallel" row axis has >=2 tiles for
    # the two TensorCores on v7x.
    tm_cap = 1024 if n_p >= 4096 else 512
    tm = _largest_tile(n_p, tm_cap)     # adj / output row tile
    tk = _largest_tile(n_p, 1024)       # contraction tile

    # bf16 MXU feed for pass 1; f32 accumulation keeps accuracy.
    x_p = _pad_to(x, (n_p, f_in_p)).astype(jnp.bfloat16)
    w_p = _pad_to(weight, (f_in_p, f_out_p)).astype(jnp.bfloat16)
    adj_p = _pad_to(adj, (n_p, n_p))    # streamed at native dtype (ideally bf16)
    if bias is None:
        b_p = jnp.zeros((1, f_out_p), jnp.float32)
    else:
        b_p = _pad_to(bias.reshape(1, f_out), (1, f_out_p)).astype(jnp.float32)

    # --- pass 1: support = x @ W  (row-tiled, f_in K-accumulated) -----------
    tm1 = _largest_tile(n_p, 512)
    tk1 = _largest_tile(f_in_p, 1024)
    # TODO(synk): for extreme f_out (>~8K) also tile the f_out axis of W here.
    support = pl.pallas_call(
        _support_kernel,
        out_shape=jax.ShapeDtypeStruct((n_p, f_out_p), jnp.bfloat16),
        grid=(n_p // tm1, f_in_p // tk1),
        in_specs=[
            pl.BlockSpec((tm1, tk1), lambda i, k: (i, k)),
            pl.BlockSpec((tk1, f_out_p), lambda i, k: (k, 0)),
        ],
        out_specs=pl.BlockSpec((tm1, f_out_p), lambda i, k: (i, 0)),
        scratch_shapes=[pltpu.VMEM((tm1, f_out_p), jnp.float32)],
        compiler_params=pltpu.CompilerParams(
            dimension_semantics=("parallel", "arbitrary"),
            vmem_limit_bytes=vmem_limit,
        ),
        cost_estimate=pl.CostEstimate(
            flops=2 * n_p * f_in_p * f_out_p,
            transcendentals=0,
            bytes_accessed=n_p * f_in_p * 2
            + (n_p // tm1) * f_in_p * f_out_p * 2
            + n_p * f_out_p * 2,
        ),
    )(x_p, w_p)

    # --- pass 2: out = adj @ support + bias  (tiled, K-accumulated) ---------
    # support is tiny compared with adj; keep it VMEM-resident across the grid
    # (constant index_map, k-slice in-kernel) when it fits a few MiB, else
    # stream (tk, f_out_p) slices per grid step.
    support_bytes = n_p * f_out_p * 2
    support_resident = support_bytes <= 8 * 1024 * 1024
    if support_resident:
        s_spec = pl.BlockSpec((n_p, f_out_p), lambda i, k: (0, 0))
        support_traffic = support_bytes
    else:
        s_spec = pl.BlockSpec((tk, f_out_p), lambda i, k: (k, 0))
        support_traffic = (n_p // tm) * n_p * f_out_p * 2

    kernel2 = functools.partial(
        _adj_matmul_kernel, tk=tk, support_resident=support_resident
    )

    # If xprof still shows exposed adj DMA, bump the adj BlockSpec to
    # pipeline_mode=pl.Buffered(3) (cheap in VMEM at these tile sizes).
    out_p = pl.pallas_call(
        kernel2,
        out_shape=jax.ShapeDtypeStruct((n_p, f_out_p), jnp.float32),
        grid=(n_p // tm, n_p // tk),
        in_specs=[
            pl.BlockSpec((tm, tk), lambda i, k: (i, k)),          # adj tile
            s_spec,                                               # support
            pl.BlockSpec((1, f_out_p), lambda i, k: (0, 0)),      # bias
        ],
        out_specs=pl.BlockSpec((tm, f_out_p), lambda i, k: (i, 0)),
        scratch_shapes=[pltpu.VMEM((tm, f_out_p), jnp.float32)],
        compiler_params=pltpu.CompilerParams(
            dimension_semantics=("parallel", "arbitrary"),
            vmem_limit_bytes=vmem_limit,
        ),
        cost_estimate=pl.CostEstimate(
            flops=2 * n_p * n_p * f_out_p,
            transcendentals=0,
            bytes_accessed=n_p * n_p * adj_p.dtype.itemsize
            + support_traffic
            + n_p * f_out_p * 4,
        ),
    )(adj_p, support, b_p)

    return out_p[:n, :f_out]


def init_params(key, in_features, out_features, bias=True):
    """Mirror of reset_parameters(): uniform(-stdv, stdv), stdv = 1/sqrt(out_features)."""
    stdv = 1.0 / math.sqrt(out_features)
    kw, kb = jax.random.split(key)
    weight = jax.random.uniform(
        kw, (in_features, out_features), jnp.float32, minval=-stdv, maxval=stdv
    )
    b = None
    if bias:
        b = jax.random.uniform(
            kb, (out_features,), jnp.float32, minval=-stdv, maxval=stdv
        )
    return weight, b


if __name__ == "__main__":
    key = jax.random.PRNGKey(0)
    k_x, k_adj, k_params = jax.random.split(key, 3)

    # Small graph: N=300 nodes (exercises padding + tile selection),
    # in_features=48, out_features=96 (exercises lane padding to 128).
    N, F_IN, F_OUT = 300, 48, 96

    x = jax.random.normal(k_x, (N, F_IN), jnp.float32)

    # Dense symmetric "adjacency-like" matrix with self-loops, row-normalized
    # in f32, then converted ONCE to bf16 upstream of the layer (the adjacency
    # is reused across GCN layers so the conversion amortizes; pass 2 then
    # streams half the HBM bytes).
    a = (jax.random.uniform(k_adj, (N, N)) < 0.1).astype(jnp.float32)
    a = jnp.maximum(a, a.T) + jnp.eye(N, dtype=jnp.float32)
    adj_f32 = a / jnp.sum(a, axis=1, keepdims=True)
    adj = adj_f32.astype(jnp.bfloat16)

    weight, bias = init_params(k_params, F_IN, F_OUT, bias=True)

    gcn = jax.jit(graph_convolution_layer)
    out = jax.block_until_ready(gcn(x, adj, weight, bias))

    # Reference check in plain f32 JAX (bf16 adj/support on the MXU -> 2e-2 tol).
    ref = adj_f32 @ (x @ weight) + bias
    assert out.shape == (N, F_OUT)
    assert jnp.allclose(out, ref, atol=2e-2, rtol=2e-2), float(
        jnp.max(jnp.abs(out - ref))
    )

    # Also exercise the bias=None path.
    out_nb = jax.block_until_ready(gcn(x, adj, weight, None))
    ref_nb = adj_f32 @ (x @ weight)
    assert jnp.allclose(out_nb, ref_nb, atol=2e-2, rtol=2e-2)

    print("KERNEL_OK")
</pallas_src>

<mosaic_0001>
module attributes {stable_mosaic.version = 11 : i64} {
  func.func @_adj_matmul_kernel(%arg0: i32, %arg1: i32, %arg2: memref<384x384xbf16, #tpu.memory_space<vmem>>, %arg3: memref<384x128xbf16, #tpu.memory_space<vmem>>, %arg4: memref<1x128xf32, #tpu.memory_space<vmem>>, %arg5: memref<384x128xf32, #tpu.memory_space<vmem>>, %arg6: memref<384x128xf32, #tpu.memory_space<vmem>>) attributes {dimension_semantics = [#tpu.dimension_semantics<parallel>, #tpu.dimension_semantics<arbitrary>], iteration_bounds = array<i64: 1, 1>, scalar_prefetch = 0 : i64, scratch_operands = 1 : i64, tpu.core_type = #tpu.core_type<tc>, window_params = [{transform_indices = @transform_0, window_bounds = array<i64: 384, 384>}, {pipeline_mode = #tpu.pipeline_mode<synchronous>, transform_indices = @transform_1, window_bounds = array<i64: 384, 128>}, {pipeline_mode = #tpu.pipeline_mode<synchronous>, transform_indices = @transform_2, window_bounds = array<i64: 1, 128>}, {transform_indices = @transform_3, window_bounds = array<i64: 384, 128>}]} {
    %c0 = arith.constant 0 : index
    %c0_0 = arith.constant 0 : index
    %0 = vector.load %arg2[%c0, %c0_0] : memref<384x384xbf16, #tpu.memory_space<vmem>>, vector<384x384xbf16>
    %c384_i32 = arith.constant 384 : i32
    %1 = arith.muli %arg1, %c384_i32 : i32
    %2 = tpu.assume_multiple %1, 128 : i32
    %3 = arith.index_cast %2 : i32 to index
    %c0_1 = arith.constant 0 : index
    %4 = vector.load %arg3[%3, %c0_1] : memref<384x128xbf16, #tpu.memory_space<vmem>>, vector<384x128xbf16>
    %cst = arith.constant dense<0.000000e+00> : vector<384x128xf32>
    %5 = tpu.matmul %0, %4, %cst {dimension_numbers = #tpu.dot_dimension_numbers<[1], [0], [0], [1], [0, 0, 1, 1], [], []>} : vector<384x384xbf16>, vector<384x128xbf16>, vector<384x128xf32> -> vector<384x128xf32>
    %c0_i32 = arith.constant 0 : i32
    %6 = arith.cmpi eq, %arg1, %c0_i32 : i32
    %7 = arith.extui %6 : i1 to i32
    %c0_i32_2 = arith.constant 0 : i32
    %8 = arith.cmpi ne, %7, %c0_i32_2 : i32
    scf.if %8 {
      %c0_7 = arith.constant 0 : index
      %c0_8 = arith.constant 0 : index
      %15 = vector.load %arg6[%c0_7, %c0_8] : memref<384x128xf32, #tpu.memory_space<vmem>>, vector<384x128xf32>
      tpu.vector_store %arg6[%c0_7, %c0_8], %5 {strides = array<i32>} : memref<384x128xf32, #tpu.memory_space<vmem>>, vector<384x128xf32>,
    } else {
    }
    %c0_i32_3 = arith.constant 0 : i32
    %9 = arith.cmpi sgt, %arg1, %c0_i32_3 : i32
    %10 = arith.extui %9 : i1 to i32
    %c0_i32_4 = arith.constant 0 : i32
    %11 = arith.cmpi ne, %10, %c0_i32_4 : i32
    scf.if %11 {
      %c0_7 = arith.constant 0 : index
      %c0_8 = arith.constant 0 : index
      %15 = vector.load %arg6[%c0_7, %c0_8] : memref<384x128xf32, #tpu.memory_space<vmem>>, vector<384x128xf32>
      %16 = arith.addf %15, %5 : vector<384x128xf32>
      %c0_9 = arith.constant 0 : index
      %c0_10 = arith.constant 0 : index
      %17 = vector.load %arg6[%c0_9, %c0_10] : memref<384x128xf32, #tpu.memory_space<vmem>>, vector<384x128xf32>
      tpu.vector_store %arg6[%c0_9, %c0_10], %16 {strides = array<i32>} : memref<384x128xf32, #tpu.memory_space<vmem>>, vector<384x128xf32>,
    } else {
    }
    %c0_i32_5 = arith.constant 0 : i32
    %12 = arith.cmpi eq, %arg1, %c0_i32_5 : i32
    %13 = arith.extui %12 : i1 to i32
    %c0_i32_6 = arith.constant 0 : i32
    %14 = arith.cmpi ne, %13, %c0_i32_6 : i32
    scf.if %14 {
      %c0_7 = arith.constant 0 : index
      %c0_8 = arith.constant 0 : index
      %15 = vector.load %arg6[%c0_7, %c0_8] : memref<384x128xf32, #tpu.memory_space<vmem>>, vector<384x128xf32>
      %c0_9 = arith.constant 0 : index
      %c0_10 = arith.constant 0 : index
      %16 = vector.load %arg4[%c0_9, %c0_10] : memref<1x128xf32, #tpu.memory_space<vmem>>, vector<1x128xf32>
      %17 = vector.broadcast %16 : vector<1x128xf32> to vector<384x128xf32>
      %18 = arith.addf %15, %17 : vector<384x128xf32>
      %c0_11 = arith.constant 0 : index
      %c0_12 = arith.constant 0 : index
      %19 = vector.load %arg5[%c0_11, %c0_12] : memref<384x128xf32, #tpu.memory_space<vmem>>, vector<384x128xf32>
      tpu.vector_store %arg5[%c0_11, %c0_12], %18 {strides = array<i32>} : memref<384x128xf32, #tpu.memory_space<vmem>>, vector<384x128xf32>,
    } else {
    }
    return
  }
  func.func @transform_0(%arg0: i32, %arg1: i32) -> (i32, i32) {
    %c0_i32 = arith.constant 0 : i32
    return %arg0, %arg1 : i32, i32
  }
  func.func @transform_1(%arg0: i32, %arg1: i32) -> (i32, i32) {
    %c0_i32 = arith.constant 0 : i32
    %c0_i32_0 = arith.constant 0 : i32
    %c0_i32_1 = arith.constant 0 : i32
    return %c0_i32, %c0_i32_0 : i32, i32
  }
  func.func @transform_2(%arg0: i32, %arg1: i32) -> (i32, i32) {
    %c0_i32 = arith.constant 0 : i32
    %c0_i32_0 = arith.constant 0 : i32
    %c0_i32_1 = arith.constant 0 : i32
    return %c0_i32, %c0_i32_0 : i32, i32
  }
  func.func @transform_3(%arg0: i32, %arg1: i32) -> (i32, i32) {
    %c0_i32 = arith.constant 0 : i32
    %c0_i32_0 = arith.constant 0 : i32
    return %arg0, %c0_i32 : i32, i32
  }
}

module attributes {stable_mosaic.version = 11 : i64} {
  func.func @_support_kernel(%arg0: i32, %arg1: i32, %arg2: memref<384x128xbf16, #tpu.memory_space<vmem>>, %arg3: memref<128x128xbf16, #tpu.memory_space<vmem>>, %arg4: memref<384x128xbf16, #tpu.memory_space<vmem>>, %arg5: memref<384x128xf32, #tpu.memory_space<vmem>>) attributes {dimension_semantics = [#tpu.dimension_semantics<parallel>, #tpu.dimension_semantics<arbitrary>], iteration_bounds = array<i64: 1, 1>, scalar_prefetch = 0 : i64, scratch_operands = 1 : i64, tpu.core_type = #tpu.core_type<tc>, window_params = [{transform_indices = @transform_0, window_bounds = array<i64: 384, 128>}, {transform_indices = @transform_1, window_bounds = array<i64: 128, 128>}, {transform_indices = @transform_2, window_bounds = array<i64: 384, 128>}]} {
    %c0 = arith.constant 0 : index
    %c0_0 = arith.constant 0 : index
    %0 = vector.load %arg2[%c0, %c0_0] : memref<384x128xbf16, #tpu.memory_space<vmem>>, vector<384x128xbf16>
    %c0_1 = arith.constant 0 : index
    %c0_2 = arith.constant 0 : index
    %1 = vector.load %arg3[%c0_1, %c0_2] : memref<128x128xbf16, #tpu.memory_space<vmem>>, vector<128x128xbf16>
    %cst = arith.constant dense<0.000000e+00> : vector<384x128xf32>
    %2 = tpu.matmul %0, %1, %cst {dimension_numbers = #tpu.dot_dimension_numbers<[1], [0], [0], [1], [0, 0, 1, 1], [], []>} : vector<384x128xbf16>, vector<128x128xbf16>, vector<384x128xf32> -> vector<384x128xf32>
    %c0_i32 = arith.constant 0 : i32
    %3 = arith.cmpi eq, %arg1, %c0_i32 : i32
    %4 = arith.extui %3 : i1 to i32
    %c0_i32_3 = arith.constant 0 : i32
    %5 = arith.cmpi ne, %4, %c0_i32_3 : i32
    scf.if %5 {
      %c0_8 = arith.constant 0 : index
      %c0_9 = arith.constant 0 : index
      %12 = vector.load %arg5[%c0_8, %c0_9] : memref<384x128xf32, #tpu.memory_space<vmem>>, vector<384x128xf32>
      tpu.vector_store %arg5[%c0_8, %c0_9], %2 {strides = array<i32>} : memref<384x128xf32, #tpu.memory_space<vmem>>, vector<384x128xf32>,
    } else {
    }
    %c0_i32_4 = arith.constant 0 : i32
    %6 = arith.cmpi sgt, %arg1, %c0_i32_4 : i32
    %7 = arith.extui %6 : i1 to i32
    %c0_i32_5 = arith.constant 0 : i32
    %8 = arith.cmpi ne, %7, %c0_i32_5 : i32
    scf.if %8 {
      %c0_8 = arith.constant 0 : index
      %c0_9 = arith.constant 0 : index
      %12 = vector.load %arg5[%c0_8, %c0_9] : memref<384x128xf32, #tpu.memory_space<vmem>>, vector<384x128xf32>
      %13 = arith.addf %12, %2 : vector<384x128xf32>
      %c0_10 = arith.constant 0 : index
      %c0_11 = arith.constant 0 : index
      %14 = vector.load %arg5[%c0_10, %c0_11] : memref<384x128xf32, #tpu.memory_space<vmem>>, vector<384x128xf32>
      tpu.vector_store %arg5[%c0_10, %c0_11], %13 {strides = array<i32>} : memref<384x128xf32, #tpu.memory_space<vmem>>, vector<384x128xf32>,
    } else {
    }
    %c0_i32_6 = arith.constant 0 : i32
    %9 = arith.cmpi eq, %arg1, %c0_i32_6 : i32
    %10 = arith.extui %9 : i1 to i32
    %c0_i32_7 = arith.constant 0 : i32
    %11 = arith.cmpi ne, %10, %c0_i32_7 : i32
    scf.if %11 {
      %c0_8 = arith.constant 0 : index
      %c0_9 = arith.constant 0 : index
      %12 = vector.load %arg5[%c0_8, %c0_9] : memref<384x128xf32, #tpu.memory_space<vmem>>, vector<384x128xf32>
      %13 = arith.truncf %12 : vector<384x128xf32> to vector<384x128xbf16>
      %c0_10 = arith.constant 0 : index
      %c0_11 = arith.constant 0 : index
      %14 = vector.load %arg4[%c0_10, %c0_11] : memref<384x128xbf16, #tpu.memory_space<vmem>>, vector<384x128xbf16>
      tpu.vector_store %arg4[%c0_10, %c0_11], %13 {strides = array<i32>} : memref<384x128xbf16, #tpu.memory_space<vmem>>, vector<384x128xbf16>,
    } else {
    }
    return
  }
  func.func @transform_0(%arg0: i32, %arg1: i32) -> (i32, i32) {
    %c0_i32 = arith.constant 0 : i32
    return %arg0, %arg1 : i32, i32
  }
  func.func @transform_1(%arg0: i32, %arg1: i32) -> (i32, i32) {
    %c0_i32 = arith.constant 0 : i32
    %c0_i32_0 = arith.constant 0 : i32
    return %arg1, %c0_i32 : i32, i32
  }
  func.func @transform_2(%arg0: i32, %arg1: i32) -> (i32, i32) {
    %c0_i32 = arith.constant 0 : i32
    %c0_i32_0 = arith.constant 0 : i32
    return %arg0, %c0_i32 : i32, i32
  }
}

</mosaic_0001>

<bundles_post_ra>
// kernel: graph_convolution_layer.2
= control target key start
LH: loop header
LB: loop body
LE: loop exit
PB: predicated region body
PF: predicated region fallthrough
CT: control target
= control target key end

     0   :  { %7 = vsyncpa [#allocation4], 0  ;;  %s1588_s0 = inlined_call_operand.hbm [shape: bf16[384,128], index: 0, kind: input, shape index: {}]   ;;  %s1589_s1 = inlined_call_operand.hbm [shape: bf16[128,128], index: 1, kind: input, shape index: {}]   ;;  %s1590_s2 = inlined_call_operand.hbm [shape: bf16[384,128], index: 2, kind: output, shape index: {}]  }
   0x1   :  { %8 = vsyncpa [#allocation7], 0 }
   0x2   :  { %9 = vsyncpa [#allocation5], 0  ;;  %s1523_s9 = smov [#allocation3]   ;;  %s1451_s13 = scalar_lea.hbm %s1588_s0, 3072 }
   0x3   :  { %s15_s10 = sshll.u32 %s1523_s9, 4  ;;  %p1452_p0 = scmp.ne.s32.totalorder %s1588_s0, %s1451_s13  ;;  %s16_s10 = int_to_ptr.vmem [resolvable:$true] %s15_s10 }
   0x4   :  { %p1455_p1 = scmp.lt.u32.totalorder %s1451_s13, %s1588_s0 }
   0x6   :  { %p1457_p2 = pnand %p1455_p1, %p1452_p0 }
   0x8   :  { %1460 = shalt.err (!%p1457_p2)
}
   0x9   :  { %s1461_s18 = scalar_lea.vmem %s16_s10, 3072  ;;  %p1466_p4 = scmp.lt.s32.totalorder %s16_s10, %s16_s10 }
   0xa   :  { %p1462_p3 = scmp.ne.s32.totalorder %s16_s10, %s1461_s18  ;;  %p1467_p5 = scmp.lt.s32.totalorder %s1461_s18, %s1461_s18 }
   0xc   :  { %p1468_p6 = por %p1467_p5, %p1466_p4 }
   0xe   :  { %p1469_p7 = pnand %p1468_p6, %p1462_p3 }
  0x10   :  { %1472 = shalt.err (!%p1469_p7)
}
  0x11   :  { %s1524_s19 = smov 64   ;;  %s1525_s20 = smov 4  }
  0x12   :  { %21 = dma.hbm_to_vmem [thread:$0]  %s1588_s0, 3072, %s16_s10, [#allocation4], %s1524_s19, %s1524_s19, %s1525_s20  }
  0x13   :  { %s1526_s23 = smov [#allocation6]   ;;  %s1473_s27 = scalar_lea.hbm %s1589_s1, 1024 }
  0x14   :  { %s27_s24 = sshll.u32 %s1526_s23, 4  ;;  %p1474_p8 = scmp.ne.s32.totalorder %s1589_s1, %s1473_s27  ;;  %s28_s24 = int_to_ptr.vmem [resolvable:$true] %s27_s24 }
  0x15   :  { %p1477_p9 = scmp.lt.u32.totalorder %s1473_s27, %s1589_s1 }
  0x17   :  { %p1479_p10 = pnand %p1477_p9, %p1474_p8 }
  0x19   :  { %1482 = shalt.err (!%p1479_p10)
}
  0x1a   :  { %s1483_s4 = scalar_lea.vmem %s28_s24, 1024  ;;  %p1488_p12 = scmp.lt.s32.totalorder %s28_s24, %s28_s24 }
  0x1b   :  { %p1484_p11 = scmp.ne.s32.totalorder %s28_s24, %s1483_s4  ;;  %p1489_p13 = scmp.lt.s32.totalorder %s1483_s4, %s1483_s4 }
  0x1d   :  { %p1490_p0 = por %p1489_p13, %p1488_p12 }
  0x1f   :  { %p1491_p1 = pnand %p1490_p0, %p1484_p11 }
  0x21   :  { %1494 = shalt.err (!%p1491_p1)
}
  0x22   :  { %33 = dma.hbm_to_vmem [thread:$0]  %s1589_s1, 1024, %s28_s24, [#allocation7], %s1524_s19, %s1524_s19, %s1525_s20  }
  0x23   :  { %1517 = dma.done.wait [#allocation4], 3072  }
  0x24   :  { %1518 = vsyncadd [#allocation4], 4294964224 }
  0x25   :  { %1519 = dma.done.wait [#allocation7], 1024  }
  0x26   :  { %1520 = vsyncadd [#allocation7], 4294966272  ;;  %v1419_v0 = vld [vmem:[#allocation6] sm:$0xff]   ;;  %v1420_v1 = vld [vmem:[#allocation6 + $0x8] sm:$0xff]   ;;  %s1527_s1 = smov [#allocation8]  }
  0x27   :  { %1334 = vmatprep.subr.bf16.mxu0 %v1419_v0  ;;  %1398 = vmatprep.subr.bf16.mxu1 %v1419_v0  ;;  %v1421_v2 = vld [vmem:[#allocation6 + $0x10] sm:$0xff]   ;;  %v1422_v3 = vld [vmem:[#allocation6 + $0x18] sm:$0xff]   ;;  %v1427_v4 = vld [vmem:[#allocation3] sm:$0xff]   ;;  %s1018_s6 = sshll.u32 %s1527_s1, 4  ;;  %s1019_s6 = int_to_ptr.vmem [resolvable:$true] %s1018_s6 }
  0x28   :  { %1335 = vmatpush3.bf16.msra.mxu0 %v1419_v0  ;;  %1406 = vmatpush3.bf16.msra.mxu1 %v1419_v0  ;;  %v1428_v5 = vld [vmem:[#allocation3 + $0x60] sm:$0xff]   ;;  %v1424_v7 = vld [vmem:[#allocation6 + $0x28] sm:$0xff]   ;;  %v1425_v8 = vld [vmem:[#allocation6 + $0x30] sm:$0xff]   ;;  %s1495_s7 = scalar_lea.vmem %s1019_s6, 3072  ;;  %p1500_p3 = scmp.lt.s32.totalorder %s1019_s6, %s1019_s6 }
  0x29   :  { %1336 = vmatprep.subr.bf16.mxu0 %v1420_v1  ;;  %1399 = vmatprep.subr.bf16.mxu1 %v1420_v1  ;;  %v1423_v6 = vld [vmem:[#allocation6 + $0x20] sm:$0xff]   ;;  %v1426_v9 = vld [vmem:[#allocation6 + $0x38] sm:$0xff]   ;;  %v1429_v10 = vld [vmem:[#allocation3 + $0x8] sm:$0xff]   ;;  %p1496_p2 = scmp.ne.s32.totalorder %s1019_s6, %s1495_s7  ;;  %p1501_p4 = scmp.lt.s32.totalorder %s1495_s7, %s1495_s7 }
  0x2a   :  { %1350 = vmatprep.mubr.bf16.mxu0 %v1427_v4  ;;  %1374 = vmatprep.mubr.bf16.mxu1 %v1428_v5  ;;  %v1430_v11 = vld [vmem:[#allocation3 + $0x68] sm:$0xff]   ;;  %v1431_v12 = vld [vmem:[#allocation3 + $0x10] sm:$0xff]   ;;  %v1433_v14 = vld [vmem:[#allocation3 + $0x18] sm:$0xff]  }
  0x2b   :  { %v1432_v13 = vld [vmem:[#allocation3 + $0x70] sm:$0xff]   ;;  %v1434_v15 = vld [vmem:[#allocation3 + $0x78] sm:$0xff]   ;;  %v1435_v16 = vld [vmem:[#allocation3 + $0x20] sm:$0xff]   ;;  %p1502_p5 = por %p1501_p4, %p1500_p3 }
  0x2c   :  { %1337 = vmatpush3.bf16.msra.mxu0 %v1420_v1  ;;  %1407 = vmatpush3.bf16.msra.mxu1 %v1420_v1  ;;  %v1436_v17 = vld [vmem:[#allocation3 + $0x80] sm:$0xff]   ;;  %v1437_v18 = vld [vmem:[#allocation3 + $0x28] sm:$0xff]   ;;  %v1439_v20 = vld [vmem:[#allocation3 + $0x30] sm:$0xff]  }
  0x2d   :  { %1338 = vmatprep.subr.bf16.mxu0 %v1421_v2  ;;  %1400 = vmatprep.subr.bf16.mxu1 %v1421_v2  ;;  %v1438_v19 = vld [vmem:[#allocation3 + $0x88] sm:$0xff]   ;;  %v1440_v21 = vld [vmem:[#allocation3 + $0x90] sm:$0xff]   ;;  %v1441_v22 = vld [vmem:[#allocation3 + $0x38] sm:$0xff]   ;;  %p1503_p6 = pnand %p1502_p5, %p1496_p2 }
  0x2e   :  { %v1442_v23 = vld [vmem:[#allocation3 + $0x98] sm:$0xff]   ;;  %v1443_v24 = vld [vmem:[#allocation3 + $0x40] sm:$0xff]   ;;  %v1445_v26 = vld [vmem:[#allocation3 + $0x48] sm:$0xff]  }
  0x2f   :  { %v1444_v25 = vld [vmem:[#allocation3 + $0xa0] sm:$0xff]   ;;  %v1446_v27 = vld [vmem:[#allocation3 + $0xa8] sm:$0xff]   ;;  %v1447_v28 = vld [vmem:[#allocation3 + $0x50] sm:$0xff]  }
  0x30   :  { %1339 = vmatpush3.bf16.msra.mxu0 %v1421_v2  ;;  %1408 = vmatpush3.bf16.msra.mxu1 %v1421_v2  ;;  %v1448_v29 = vld [vmem:[#allocation3 + $0xb0] sm:$0xff]   ;;  %v1449_v30 = vld [vmem:[#allocation3 + $0x58] sm:$0xff]  }
  0x31   :  { %1340 = vmatprep.subr.bf16.mxu0 %v1422_v3  ;;  %1401 = vmatprep.subr.bf16.mxu1 %v1422_v3  ;;  %v1450_v31 = vld [vmem:[#allocation3 + $0xb8] sm:$0xff]  }
  0x34   :  { %1341 = vmatpush3.bf16.msra.mxu0 %v1422_v3  ;;  %1409 = vmatpush3.bf16.msra.mxu1 %v1422_v3 }
  0x35   :  { %1342 = vmatprep.subr.bf16.mxu0 %v1423_v6  ;;  %1402 = vmatprep.subr.bf16.mxu1 %v1423_v6 }
  0x38   :  { %1343 = vmatpush3.bf16.msra.mxu0 %v1423_v6  ;;  %1410 = vmatpush3.bf16.msra.mxu1 %v1423_v6 }
  0x39   :  { %1344 = vmatprep.subr.bf16.mxu0 %v1424_v7  ;;  %1403 = vmatprep.subr.bf16.mxu1 %v1424_v7 }
  0x3c   :  { %1345 = vmatpush3.bf16.msra.mxu0 %v1424_v7  ;;  %1411 = vmatpush3.bf16.msra.mxu1 %v1424_v7 }
  0x3d   :  { %1346 = vmatprep.subr.bf16.mxu0 %v1425_v8  ;;  %1404 = vmatprep.subr.bf16.mxu1 %v1425_v8 }
  0x40   :  { %1347 = vmatpush3.bf16.msra.mxu0 %v1425_v8  ;;  %1412 = vmatpush3.bf16.msra.mxu1 %v1425_v8 }
  0x41   :  { %1348 = vmatprep.subr.bf16.mxu0 %v1426_v9  ;;  %1405 = vmatprep.subr.bf16.mxu1 %v1426_v9 }
  0x44   :  { %1349 = vmatpush3.bf16.msra.mxu0 %v1426_v9  ;;  %1413 = vmatpush3.bf16.msra.mxu1 %v1426_v9 }
  0x47   :  { %1351 = vmatmul.mubr.bf16.vlgmr.msra.gmra.mrb[0].mxu0 %v1429_v10  ;;  %1375 = vmatmul.mubr.bf16.vlgmr.msra.gmra.mrb[0].mxu1 %v1430_v11 }
  0x48   :  { %1354 = vmatprep.mubr.bf16.mxu0 %v1431_v12  ;;  %1378 = vmatprep.mubr.bf16.mxu1 %v1432_v13 }
  0x4f   :  { %1355 = vmatmul.mubr.bf16.gmra.mrb[4].mxu0 %v1433_v14  ;;  %1379 = vmatmul.mubr.bf16.gmra.mrb[4].mxu1 %v1434_v15 }
  0x50   :  { %1358 = vmatprep.mubr.bf16.mxu0 %v1435_v16  ;;  %1382 = vmatprep.mubr.bf16.mxu1 %v1436_v17 }
  0x57   :  { %1359 = vmatmul.mubr.bf16.gmra.mrb[8].mxu0 %v1437_v18  ;;  %1383 = vmatmul.mubr.bf16.gmra.mrb[8].mxu1 %v1438_v19 }
  0x58   :  { %1362 = vmatprep.mubr.bf16.mxu0 %v1439_v20  ;;  %1386 = vmatprep.mubr.bf16.mxu1 %v1440_v21 }
  0x5f   :  { %1363 = vmatmul.mubr.bf16.gmra.mrb[12].mxu0 %v1441_v22  ;;  %1387 = vmatmul.mubr.bf16.gmra.mrb[12].mxu1 %v1442_v23 }
  0x60   :  { %1366 = vmatprep.mubr.bf16.mxu0 %v1443_v24  ;;  %1390 = vmatprep.mubr.bf16.mxu1 %v1444_v25 }
  0x67   :  { %1367 = vmatmul.mubr.bf16.gmra.mrb[16].mxu0 %v1445_v26  ;;  %1391 = vmatmul.mubr.bf16.gmra.mrb[16].mxu1 %v1446_v27 }
  0x68   :  { %1370 = vmatprep.mubr.bf16.mxu0 %v1447_v28  ;;  %1394 = vmatprep.mubr.bf16.mxu1 %v1448_v29 }
  0x6f   :  { %1371 = vmatmul.mubr.bf16.gmra.mrb[20].mxu0 %v1449_v30  ;;  %1395 = vmatmul.mubr.bf16.gmra.mrb[20].mxu1 %v1450_v31 }
 0x11a   :  { %v1352_v32 = vpop.f32.mrb[0].mxu0  ;;  %v1376_v33 = vpop.f32.mrb[0].mxu1 }
 0x11b   :  { %v331_v34 = vpop.f32.mrb[1].mxu0  ;;  %v427_v35 = vpop.f32.mrb[1].mxu1 }
 0x11c   :  { %v1353_v36 = vpop.f32.mrb[2].mxu0  ;;  %v1377_v37 = vpop.f32.mrb[2].mxu1 }
 0x11d   :  { %v1167_v38 = vpack.c.bf16 %v1353_v36, %v1352_v32  ;;  %v1227_v39 = vpack.c.bf16 %v1377_v37, %v1376_v33  ;;  %v334_v40 = vpop.f32.mrb[3].mxu0  ;;  %v430_v41 = vpop.f32.mrb[3].mxu1 }
 0x11e   :  { %v1162_v42 = vpack.c.bf16 %v334_v40, %v331_v34  ;;  %v1222_v43 = vpack.c.bf16 %v430_v41, %v427_v35 }
 0x11f   :  { %1279 = vst [vmem:[#allocation8 + $0x8] sm:$0xff] %v1167_v38   ;;  %1291 = vst [vmem:[#allocation8 + $0x68] sm:$0xff] %v1227_v39  }
 0x120   :  { %1163 = vst [vmem:[#allocation8] sm:$0xff] %v1162_v42   ;;  %1290 = vst [vmem:[#allocation8 + $0x60] sm:$0xff] %v1222_v43  }
 0x122   :  { %v1356_v44 = vpop.f32.mrb[4].mxu0  ;;  %v1380_v45 = vpop.f32.mrb[4].mxu1 }
 0x123   :  { %v347_v46 = vpop.f32.mrb[5].mxu0  ;;  %v443_v47 = vpop.f32.mrb[5].mxu1 }
 0x124   :  { %v1357_v48 = vpop.f32.mrb[6].mxu0  ;;  %v1381_v49 = vpop.f32.mrb[6].mxu1 }
 0x125   :  { %v1177_v50 = vpack.c.bf16 %v1357_v48, %v1356_v44  ;;  %v1237_v51 = vpack.c.bf16 %v1381_v49, %v1380_v45  ;;  %v350_v52 = vpop.f32.mrb[7].mxu0  ;;  %v446_v53 = vpop.f32.mrb[7].mxu1 }
 0x126   :  { %v1172_v54 = vpack.c.bf16 %v350_v52, %v347_v46  ;;  %v1232_v55 = vpack.c.bf16 %v446_v53, %v443_v47 }
 0x127   :  { %1281 = vst [vmem:[#allocation8 + $0x18] sm:$0xff] %v1177_v50   ;;  %1293 = vst [vmem:[#allocation8 + $0x78] sm:$0xff] %v1237_v51  }
 0x128   :  { %1280 = vst [vmem:[#allocation8 + $0x10] sm:$0xff] %v1172_v54   ;;  %1292 = vst [vmem:[#allocation8 + $0x70] sm:$0xff] %v1232_v55  }
 0x12a   :  { %v1360_v56 = vpop.f32.mrb[8].mxu0  ;;  %v1384_v57 = vpop.f32.mrb[8].mxu1 }
 0x12b   :  { %v363_v58 = vpop.f32.mrb[9].mxu0  ;;  %v459_v59 = vpop.f32.mrb[9].mxu1 }
 0x12c   :  { %v1361_v60 = vpop.f32.mrb[10].mxu0  ;;  %v1385_v61 = vpop.f32.mrb[10].mxu1 }
 0x12d   :  { %v1187_v62 = vpack.c.bf16 %v1361_v60, %v1360_v56  ;;  %v1247_v63 = vpack.c.bf16 %v1385_v61, %v1384_v57  ;;  %v366_v0 = vpop.f32.mrb[11].mxu0  ;;  %v462_v1 = vpop.f32.mrb[11].mxu1 }
 0x12e   :  { %v1182_v2 = vpack.c.bf16 %v366_v0, %v363_v58  ;;  %v1242_v3 = vpack.c.bf16 %v462_v1, %v459_v59 }
 0x12f   :  { %1283 = vst [vmem:[#allocation8 + $0x28] sm:$0xff] %v1187_v62   ;;  %1295 = vst [vmem:[#allocation8 + $0x88] sm:$0xff] %v1247_v63  }
 0x130   :  { %1282 = vst [vmem:[#allocation8 + $0x20] sm:$0xff] %v1182_v2   ;;  %1294 = vst [vmem:[#allocation8 + $0x80] sm:$0xff] %v1242_v3  }
 0x132   :  { %v1364_v4 = vpop.f32.mrb[12].mxu0  ;;  %v1388_v5 = vpop.f32.mrb[12].mxu1 }
 0x133   :  { %v379_v6 = vpop.f32.mrb[13].mxu0  ;;  %v475_v7 = vpop.f32.mrb[13].mxu1 }
 0x134   :  { %v1365_v8 = vpop.f32.mrb[14].mxu0  ;;  %v1389_v9 = vpop.f32.mrb[14].mxu1 }
 0x135   :  { %v1197_v10 = vpack.c.bf16 %v1365_v8, %v1364_v4  ;;  %v1257_v11 = vpack.c.bf16 %v1389_v9, %v1388_v5  ;;  %v382_v12 = vpop.f32.mrb[15].mxu0  ;;  %v478_v13 = vpop.f32.mrb[15].mxu1 }
 0x136   :  { %v1192_v14 = vpack.c.bf16 %v382_v12, %v379_v6  ;;  %v1252_v15 = vpack.c.bf16 %v478_v13, %v475_v7 }
 0x137   :  { %1285 = vst [vmem:[#allocation8 + $0x38] sm:$0xff] %v1197_v10   ;;  %1297 = vst [vmem:[#allocation8 + $0x98] sm:$0xff] %v1257_v11  }
 0x138   :  { %1284 = vst [vmem:[#allocation8 + $0x30] sm:$0xff] %v1192_v14   ;;  %1296 = vst [vmem:[#allocation8 + $0x90] sm:$0xff] %v1252_v15  }
 0x13a   :  { %v1368_v16 = vpop.f32.mrb[16].mxu0  ;;  %v1392_v17 = vpop.f32.mrb[16].mxu1 }
 0x13b   :  { %v395_v18 = vpop.f32.mrb[17].mxu0  ;;  %v491_v19 = vpop.f32.mrb[17].mxu1 }
 0x13c   :  { %v1369_v20 = vpop.f32.mrb[18].mxu0  ;;  %v1393_v21 = vpop.f32.mrb[18].mxu1 }
 0x13d   :  { %v1207_v22 = vpack.c.bf16 %v1369_v20, %v1368_v16  ;;  %v1267_v23 = vpack.c.bf16 %v1393_v21, %v1392_v17  ;;  %v398_v24 = vpop.f32.mrb[19].mxu0  ;;  %v494_v25 = vpop.f32.mrb[19].mxu1 }
 0x13e   :  { %v1202_v26 = vpack.c.bf16 %v398_v24, %v395_v18  ;;  %v1262_v27 = vpack.c.bf16 %v494_v25, %v491_v19 }
 0x13f   :  { %1287 = vst [vmem:[#allocation8 + $0x48] sm:$0xff] %v1207_v22   ;;  %1299 = vst [vmem:[#allocation8 + $0xa8] sm:$0xff] %v1267_v23  }
 0x140   :  { %1286 = vst [vmem:[#allocation8 + $0x40] sm:$0xff] %v1202_v26   ;;  %1298 = vst [vmem:[#allocation8 + $0xa0] sm:$0xff] %v1262_v27  }
 0x142   :  { %v1372_v28 = vpop.f32.mrb[20].mxu0  ;;  %v1396_v29 = vpop.f32.mrb[20].mxu1 }
 0x143   :  { %v411_v30 = vpop.f32.mrb[21].mxu0  ;;  %v507_v31 = vpop.f32.mrb[21].mxu1 }
 0x144   :  { %v1373_v32 = vpop.f32.mrb[22].mxu0  ;;  %v1397_v33 = vpop.f32.mrb[22].mxu1 }
 0x145   :  { %v1217_v34 = vpack.c.bf16 %v1373_v32, %v1372_v28  ;;  %v1277_v35 = vpack.c.bf16 %v1397_v33, %v1396_v29  ;;  %v414_v36 = vpop.f32.mrb[23].mxu0  ;;  %v510_v37 = vpop.f32.mrb[23].mxu1 }
 0x146   :  { %v1212_v38 = vpack.c.bf16 %v414_v36, %v411_v30  ;;  %v1272_v39 = vpack.c.bf16 %v510_v37, %v507_v31 }
 0x147   :  { %1289 = vst [vmem:[#allocation8 + $0x58] sm:$0xff] %v1217_v34   ;;  %1301 = vst [vmem:[#allocation8 + $0xb8] sm:$0xff] %v1277_v35  }
 0x148   :  { %1288 = vst [vmem:[#allocation8 + $0x50] sm:$0xff] %v1212_v38   ;;  %1300 = vst [vmem:[#allocation8 + $0xb0] sm:$0xff] %v1272_v39  }
 0x149   :  { %1506 = shalt.err (!%p1503_p6)
}
 0x14a   :  { %s1507_s10 = scalar_lea.hbm %s1590_s2, 3072 }
 0x14b   :  { %p1508_p7 = scmp.ne.s32.totalorder %s1590_s2, %s1507_s10  ;;  %p1511_p8 = scmp.lt.u32.totalorder %s1507_s10, %s1590_s2 }
 0x14d   :  { %p1513_p9 = pnand %p1511_p8, %p1508_p7 }
 0x14f   :  { %1516 = shalt.err (!%p1513_p9)
}
 0x150   :  { %1024 = dma.vmem_to_hbm [thread:$0]  %s1019_s6, 3072, %s1590_s2, [#allocation5], %s1524_s19, %s1524_s19, %s1525_s20  }
 0x151   :  { %1521 = dma.done.wait [#allocation5], 3072  }
 0x152   :  { %1522 = vsyncadd [#allocation5], 4294964224 }
 0x153   :  { %1028 = vsyncpa [#allocation4], 1 }
 0x154   :  { %1029 = vsyncpa [#allocation7], 1 }
 0x155   :  { %1030 = vsyncpa [#allocation5], 1 }

// kernel: graph_convolution_layer.3
= control target key start
LH: loop header
LB: loop body
LE: loop exit
PB: predicated region body
PF: predicated region fallthrough
CT: control target
= control target key end

     0   :  { %8 = vsyncpa [#allocation4], 0  ;;  %s2218_s0 = inlined_call_operand.hbm [shape: bf16[384,384], index: 0, kind: input, shape index: {}]   ;;  %s2219_s1 = inlined_call_operand.hbm [shape: bf16[384,128], index: 1, kind: input, shape index: {}]   ;;  %s2220_s2 = inlined_call_operand.hbm [shape: f32[1,128], index: 2, kind: input, shape index: {}]   ;;  %s2221_s3 = inlined_call_operand.hbm [shape: f32[384,128], index: 3, kind: output, shape index: {}]  }
   0x1   :  { %9 = vsyncpa [#allocation7], 0 }
   0x2   :  { %10 = vsyncpa [#allocation5], 0  ;;  %s2006_s12 = smov [#allocation6]   ;;  %s1912_s16 = scalar_lea.hbm %s2219_s1, 3072 }
   0x3   :  { %s28_s13 = sshll.u32 %s2006_s12, 4  ;;  %p1913_p0 = scmp.ne.s32.totalorder %s2219_s1, %s1912_s16  ;;  %s29_s13 = int_to_ptr.vmem [resolvable:$true] %s28_s13 }
   0x4   :  { %p1916_p1 = scmp.lt.u32.totalorder %s1912_s16, %s2219_s1 }
   0x6   :  { %p1918_p2 = pnand %p1916_p1, %p1913_p0 }
   0x8   :  { %1921 = shalt.err (!%p1918_p2)
}
   0x9   :  { %s1922_s21 = scalar_lea.vmem %s29_s13, 3072  ;;  %p1927_p4 = scmp.lt.s32.totalorder %s29_s13, %s29_s13 }
   0xa   :  { %p1923_p3 = scmp.ne.s32.totalorder %s29_s13, %s1922_s21  ;;  %p1928_p5 = scmp.lt.s32.totalorder %s1922_s21, %s1922_s21 }
   0xc   :  { %p1929_p6 = por %p1928_p5, %p1927_p4 }
   0xe   :  { %p1930_p7 = pnand %p1929_p6, %p1923_p3 }
  0x10   :  { %1933 = shalt.err (!%p1930_p7)
}
  0x11   :  { %s2007_s22 = smov 64   ;;  %s2008_s23 = smov 4  }
  0x12   :  { %34 = dma.hbm_to_vmem [thread:$0]  %s2219_s1, 3072, %s29_s13, [#allocation7], %s2007_s22, %s2007_s22, %s2008_s23  }
  0x13   :  { %s2009_s26 = smov [#allocation3]   ;;  %s1934_s30 = scalar_lea.hbm %s2218_s0, 9216 }
  0x14   :  { %s16_s27 = sshll.u32 %s2009_s26, 4  ;;  %p1935_p8 = scmp.ne.s32.totalorder %s2218_s0, %s1934_s30  ;;  %s17_s27 = int_to_ptr.vmem [resolvable:$true] %s16_s27 }
  0x15   :  { %p1938_p9 = scmp.lt.u32.totalorder %s1934_s30, %s2218_s0 }
  0x17   :  { %p1940_p10 = pnand %p1938_p9, %p1935_p8 }
  0x19   :  { %1943 = shalt.err (!%p1940_p10)
}
  0x1a   :  { %s1944_s8 = scalar_lea.vmem %s17_s27, 9216  ;;  %p1949_p12 = scmp.lt.s32.totalorder %s17_s27, %s17_s27 }
  0x1b   :  { %p1945_p11 = scmp.ne.s32.totalorder %s17_s27, %s1944_s8  ;;  %p1950_p13 = scmp.lt.s32.totalorder %s1944_s8, %s1944_s8 }
  0x1d   :  { %p1951_p0 = por %p1950_p13, %p1949_p12 }
  0x1f   :  { %p1952_p1 = pnand %p1951_p0, %p1945_p11 }
  0x21   :  { %1955 = shalt.err (!%p1952_p1)
}
  0x22   :  { %s2010_s1 = smov 192   ;;  %s2011_s9 = smov 12  }
  0x23   :  { %22 = dma.hbm_to_vmem [thread:$0]  %s2218_s0, 9216, %s17_s27, [#allocation4], %s2010_s1, %s2010_s1, %s2011_s9  }
  0x24   :  { %s2012_s12 = smov [#allocation8]   ;;  %s1956_s16 = scalar_lea.hbm %s2220_s2, 16 }
  0x25   :  { %s41_s13 = sshll.u32 %s2012_s12, 4  ;;  %p1957_p2 = scmp.ne.s32.totalorder %s2220_s2, %s1956_s16  ;;  %s42_s13 = int_to_ptr.vmem [resolvable:$true] %s41_s13 }
  0x26   :  { %p1960_p3 = scmp.lt.u32.totalorder %s1956_s16, %s2220_s2 }
  0x28   :  { %p1962_p4 = pnand %p1960_p3, %p1957_p2 }
  0x2a   :  { %1965 = shalt.err (!%p1962_p4)
}
  0x2b   :  { %s1966_s21 = scalar_lea.vmem %s42_s13, 16  ;;  %s1970_s0 = scalar_lea.vmem %s42_s13, 32 }
  0x2c   :  { %p1967_p5 = scmp.ne.s32.totalorder %s42_s13, %s1966_s21  ;;  %p1971_p6 = scmp.lt.s32.totalorder %s42_s13, %s42_s13 }
  0x2d   :  { %p1972_p7 = scmp.lt.s32.totalorder %s1970_s0, %s1966_s21 }
  0x2f   :  { %p1973_p8 = por %p1972_p7, %p1971_p6 }
  0x31   :  { %p1974_p9 = pnand %p1973_p8, %p1967_p5 }
  0x33   :  { %1977 = shalt.err (!%p1974_p9)
}
  0x34   :  { %44 = dma.hbm_to_vmem [thread:$0]  %s2220_s2, 16, %s42_s13, [#allocation7]  }
  0x35   :  { %2000 = dma.done.wait [#allocation4], 9216  }
  0x36   :  { %2001 = vsyncadd [#allocation4], 4294958080 }
  0x37   :  { %2002 = dma.done.wait [#allocation7], 3088  }
  0x38   :  { %2003 = vsyncadd [#allocation7], 4294964208  ;;  %v2013_v0 = vmov 0   ;;  %v1792_v1 = vld [vmem:[#allocation6] sm:$0xff]   ;;  %v1793_v2 = vld [vmem:[#allocation6 + $0x8] sm:$0xff]   ;;  %s2014_s2 = smov [#allocation9]  }
  0x39   :  { %732 = vmatprep.subr.bf16.mxu0 %v2013_v0  ;;  %1749 = vmatprep.subr.bf16.mxu1 %v2013_v0  ;;  %v1794_v3 = vld [vmem:[#allocation6 + $0x10] sm:$0xff]   ;;  %v1795_v4 = vld [vmem:[#allocation6 + $0x18] sm:$0xff]   ;;  %v1796_v5 = vld [vmem:[#allocation6 + $0x20] sm:$0xff]   ;;  %s1541_s24 = sshll.u32 %s2014_s2, 4  ;;  %s1542_s24 = int_to_ptr.vmem [resolvable:$true] %s1541_s24 }
  0x3a   :  { %733 = vmatpush1.bf16.msra.mxu0 %v1792_v1  ;;  %1765 = vmatpush1.bf16.msra.mxu1 %v1792_v1  ;;  %v1810_v6 = vld [vmem:[#allocation3 + $0x4] ss:$12 sps:$4 sm:$0xff]   ;;  %v1797_v7 = vld [vmem:[#allocation6 + $0x28] sm:$0xff]   ;;  %v1813_v8 = vld [vmem:[#allocation3 + $0x1b4] ss:$12 sps:$4 sm:$0xff]   ;;  %s1978_s25 = scalar_lea.vmem %s1542_s24, 6144  ;;  %p1983_p11 = scmp.lt.s32.totalorder %s1542_s24, %s1542_s24 }
  0x3b   :  { %734 = vmatprep.subr.bf16.mxu0 %v2013_v0  ;;  %1750 = vmatprep.subr.bf16.mxu1 %v2013_v0  ;;  %v1798_v9 = vld [vmem:[#allocation6 + $0x30] sm:$0xff]   ;;  %v1799_v10 = vld [vmem:[#allocation6 + $0x38] sm:$0xff]   ;;  %v1800_v11 = vld [vmem:[#allocation6 + $0x40] sm:$0xff]   ;;  %p1979_p10 = scmp.ne.s32.totalorder %s1542_s24, %s1978_s25  ;;  %p1984_p12 = scmp.lt.s32.totalorder %s1978_s25, %s1978_s25 }
  0x3c   :  { %764 = vmatprep.mubr.bf16.mxu0 %v1810_v6  ;;  %908 = vmatprep.mubr.bf16.mxu1 %v1813_v8  ;;  %v1801_v12 = vld [vmem:[#allocation6 + $0x48] sm:$0xff]   ;;  %v1802_v13 = vld [vmem:[#allocation6 + $0x50] sm:$0xff]   ;;  %v1803_v14 = vld [vmem:[#allocation6 + $0x58] sm:$0xff]  }
  0x3d   :  { %v1804_v15 = vld [vmem:[#allocation6 + $0x60] sm:$0xff]   ;;  %v1805_v16 = vld [vmem:[#allocation6 + $0x68] sm:$0xff]   ;;  %v1806_v17 = vld [vmem:[#allocation6 + $0x70] sm:$0xff]   ;;  %p1985_p13 = por %p1984_p12, %p1983_p11 }
  0x3e   :  { %735 = vmatpush1.bf16.msra.mxu0 %v1793_v2  ;;  %1766 = vmatpush1.bf16.msra.mxu1 %v1793_v2  ;;  %v1807_v18 = vld [vmem:[#allocation6 + $0x78] sm:$0xff]   ;;  %v1808_v19 = vld [vmem:[#allocation3] ss:$12 sps:$4 sm:$0xff]   ;;  %v1822_v25 = vld [vmem:[#allocation6 + $0x90] sm:$0xff]  }
  0x3f   :  { %736 = vmatprep.subr.bf16.mxu0 %v2013_v0  ;;  %1751 = vmatprep.subr.bf16.mxu1 %v2013_v0  ;;  %v1814_v20 = vld [vmem:[#allocation6 + $0x80] sm:$0xff]   ;;  %v1811_v21 = vld [vmem:[#allocation3 + $0x1b0] ss:$12 sps:$4 sm:$0xff]   ;;  %v1815_v22 = vld [vmem:[#allocation6 + $0x88] sm:$0xff]   ;;  %p1986_p0 = pnand %p1985_p13, %p1979_p10 }
  0x40   :  { %v1816_v23 = vld [vmem:[#allocation3 + $0x1c] ss:$12 sps:$4 sm:$0xff]   ;;  %v1818_v24 = vld [vmem:[#allocation3 + $0x1cc] ss:$12 sps:$4 sm:$0xff]   ;;  %v1823_v28 = vld [vmem:[#allocation3 + $0x34] ss:$12 sps:$4 sm:$0xff]  }
  0x41   :  { %v1820_v26 = vld [vmem:[#allocation3 + $0x18] ss:$12 sps:$4 sm:$0xff]   ;;  %v1821_v27 = vld [vmem:[#allocation3 + $0x1c8] ss:$12 sps:$4 sm:$0xff]   ;;  %v1827_v32 = vld [vmem:[#allocation3 + $0x30] ss:$12 sps:$4 sm:$0xff]  }
  0x42   :  { %737 = vmatpush1.bf16.msra.mxu0 %v1794_v3  ;;  %1767 = vmatpush1.bf16.msra.mxu1 %v1794_v3  ;;  %v1825_v29 = vld [vmem:[#allocation3 + $0x1e4] ss:$12 sps:$4 sm:$0xff]   ;;  %v1829_v30 = vld [vmem:[#allocation6 + $0x98] sm:$0xff]   ;;  %v1828_v33 = vld [vmem:[#allocation3 + $0x1e0] ss:$12 sps:$4 sm:$0xff]  }
  0x43   :  { %738 = vmatprep.subr.bf16.mxu0 %v2013_v0  ;;  %1752 = vmatprep.subr.bf16.mxu1 %v2013_v0  ;;  %v1836_v31 = vld [vmem:[#allocation6 + $0xa0] sm:$0xff]   ;;  %v1830_v34 = vld [vmem:[#allocation3 + $0x4c] ss:$12 sps:$4 sm:$0xff]   ;;  %v1832_v35 = vld [vmem:[#allocation3 + $0x1fc] ss:$12 sps:$4 sm:$0xff]  }
  0x44   :  { %v1837_v36 = vld [vmem:[#allocation6 + $0xa8] sm:$0xff]   ;;  %v1844_v37 = vld [vmem:[#allocation6 + $0xb0] sm:$0xff]   ;;  %v1835_v39 = vld [vmem:[#allocation3 + $0x1f8] ss:$12 sps:$4 sm:$0xff]  }
  0x45   :  { %v1834_v38 = vld [vmem:[#allocation3 + $0x48] ss:$12 sps:$4 sm:$0xff]   ;;  %v1838_v40 = vld [vmem:[#allocation3 + $0x64] ss:$12 sps:$4 sm:$0xff]   ;;  %v1851_v42 = vld [vmem:[#allocation6 + $0xb8] sm:$0xff]  }
  0x46   :  { %739 = vmatpush1.bf16.msra.mxu0 %v1795_v4  ;;  %1768 = vmatpush1.bf16.msra.mxu1 %v1795_v4  ;;  %v1840_v41 = vld [vmem:[#allocation3 + $0x214] ss:$12 sps:$4 sm:$0xff]   ;;  %v1843_v44 = vld [vmem:[#allocation3 + $0x210] ss:$12 sps:$4 sm:$0xff]   ;;  %v1847_v46 = vld [vmem:[#allocation3 + $0x22c] ss:$12 sps:$4 sm:$0xff]  }
  0x47   :  { %740 = vmatprep.subr.bf16.mxu0 %v2013_v0  ;;  %1753 = vmatprep.subr.bf16.mxu1 %v2013_v0  ;;  %v1842_v43 = vld [vmem:[#allocation3 + $0x60] ss:$12 sps:$4 sm:$0xff]   ;;  %v1845_v45 = vld [vmem:[#allocation3 + $0x7c] ss:$12 sps:$4 sm:$0xff]   ;;  %v1849_v47 = vld [vmem:[#allocation3 + $0x78] ss:$12 sps:$4 sm:$0xff]  }
  0x48   :  { %v1850_v48 = vld [vmem:[#allocation3 + $0x228] ss:$12 sps:$4 sm:$0xff]   ;;  %v1855_v51 = vld [vmem:[#allocation3 + $0x90] ss:$12 sps:$4 sm:$0xff]   ;;  %v1856_v52 = vld [vmem:[#allocation3 + $0x20] ss:$12 sps:$4 sm:$0xff]  }
  0x49   :  { %v1852_v49 = vld [vmem:[#allocation3 + $0x94] ss:$12 sps:$4 sm:$0xff]   ;;  %v1857_v53 = vld [vmem:[#allocation3 + $0xac] ss:$12 sps:$4 sm:$0xff]   ;;  %v1861_v56 = vld [vmem:[#allocation3 + $0x50] ss:$12 sps:$4 sm:$0xff]  }
  0x4a   :  { %741 = vmatpush1.bf16.msra.mxu0 %v1796_v5  ;;  %1769 = vmatpush1.bf16.msra.mxu1 %v1796_v5  ;;  %v1854_v50 = vld [vmem:[#allocation3 + $0x8] ss:$12 sps:$4 sm:$0xff]   ;;  %v1859_v54 = vld [vmem:[#allocation3 + $0x38] ss:$12 sps:$4 sm:$0xff]   ;;  %v1865_v59 = vld [vmem:[#allocation3 + $0xc0] ss:$12 sps:$4 sm:$0xff]  }
  0x4b   :  { %742 = vmatprep.subr.bf16.mxu0 %v2013_v0  ;;  %1754 = vmatprep.subr.bf16.mxu1 %v2013_v0  ;;  %v1860_v55 = vld [vmem:[#allocation3 + $0xa8] ss:$12 sps:$4 sm:$0xff]   ;;  %v1862_v57 = vld [vmem:[#allocation3 + $0xc4] ss:$12 sps:$4 sm:$0xff]   ;;  %v1866_v60 = vld [vmem:[#allocation3 + $0x80] ss:$12 sps:$4 sm:$0xff]  }
  0x4c   :  { %v1864_v58 = vld [vmem:[#allocation3 + $0x68] ss:$12 sps:$4 sm:$0xff]   ;;  %v1869_v62 = vld [vmem:[#allocation3 + $0x98] ss:$12 sps:$4 sm:$0xff]   ;;  %v1875_v3 = vld [vmem:[#allocation3 + $0xf0] ss:$12 sps:$4 sm:$0xff]  }
  0x4d   :  { %v1867_v61 = vld [vmem:[#allocation3 + $0xdc] ss:$12 sps:$4 sm:$0xff]   ;;  %v1870_v63 = vld [vmem:[#allocation3 + $0xd8] ss:$12 sps:$4 sm:$0xff]   ;;  %v1872_v1 = vld [vmem:[#allocation3 + $0xf4] ss:$12 sps:$4 sm:$0xff]  }
  0x4e   :  { %743 = vmatpush1.bf16.msra.mxu0 %v1797_v7  ;;  %1770 = vmatpush1.bf16.msra.mxu1 %v1797_v7  ;;  %v1874_v2 = vld [vmem:[#allocation3 + $0xc8] ss:$12 sps:$4 sm:$0xff]   ;;  %v1876_v4 = vld [vmem:[#allocation3 + $0xe0] ss:$12 sps:$4 sm:$0xff]   ;;  %v1879_v6 = vld [vmem:[#allocation3 + $0xf8] ss:$12 sps:$4 sm:$0xff]  }
  0x4f   :  { %744 = vmatprep.subr.bf16.mxu0 %v2013_v0  ;;  %1755 = vmatprep.subr.bf16.mxu1 %v2013_v0  ;;  %v1877_v5 = vld [vmem:[#allocation3 + $0x10c] ss:$12 sps:$4 sm:$0xff]   ;;  %v1880_v7 = vld [vmem:[#allocation3 + $0x108] ss:$12 sps:$4 sm:$0xff]   ;;  %v1881_v8 = vld [vmem:[#allocation3 + $0x110] ss:$12 sps:$4 sm:$0xff]  }
  0x52   :  { %745 = vmatpush1.bf16.msra.mxu0 %v1798_v9  ;;  %1771 = vmatpush1.bf16.msra.mxu1 %v1798_v9  ;;  %v1882_v9 = vld [vmem:[#allocation3 + $0x124] ss:$12 sps:$4 sm:$0xff]  }
  0x53   :  { %746 = vmatprep.subr.bf16.mxu0 %v2013_v0  ;;  %1756 = vmatprep.subr.bf16.mxu1 %v2013_v0 }
  0x56   :  { %747 = vmatpush1.bf16.msra.mxu0 %v1799_v10  ;;  %1772 = vmatpush1.bf16.msra.mxu1 %v1799_v10  ;;  %v1884_v10 = vld [vmem:[#allocation3 + $0x128] ss:$12 sps:$4 sm:$0xff]  }
  0x57   :  { %748 = vmatprep.subr.bf16.mxu0 %v2013_v0  ;;  %1757 = vmatprep.subr.bf16.mxu1 %v2013_v0 }
  0x5a   :  { %749 = vmatpush1.bf16.msra.mxu0 %v1800_v11  ;;  %1773 = vmatpush1.bf16.msra.mxu1 %v1800_v11  ;;  %v1885_v11 = vld [vmem:[#allocation3 + $0x120] ss:$12 sps:$4 sm:$0xff]  }
  0x5b   :  { %750 = vmatprep.subr.bf16.mxu0 %v2013_v0  ;;  %1758 = vmatprep.subr.bf16.mxu1 %v2013_v0 }
  0x5e   :  { %751 = vmatpush1.bf16.msra.mxu0 %v1801_v12  ;;  %1774 = vmatpush1.bf16.msra.mxu1 %v1801_v12  ;;  %v1886_v12 = vld [vmem:[#allocation3 + $0x140] ss:$12 sps:$4 sm:$0xff]  }
  0x5f   :  { %752 = vmatprep.subr.bf16.mxu0 %v2013_v0  ;;  %1759 = vmatprep.subr.bf16.mxu1 %v2013_v0 }
  0x62   :  { %753 = vmatpush1.bf16.msra.mxu0 %v1802_v13  ;;  %1775 = vmatpush1.bf16.msra.mxu1 %v1802_v13  ;;  %v1887_v13 = vld [vmem:[#allocation3 + $0x13c] ss:$12 sps:$4 sm:$0xff]  }
  0x63   :  { %754 = vmatprep.subr.bf16.mxu0 %v2013_v0  ;;  %1760 = vmatprep.subr.bf16.mxu1 %v2013_v0 }
  0x66   :  { %755 = vmatpush1.bf16.msra.mxu0 %v1803_v14  ;;  %1776 = vmatpush1.bf16.msra.mxu1 %v1803_v14  ;;  %v1889_v14 = vld [vmem:[#allocation3 + $0x158] ss:$12 sps:$4 sm:$0xff]  }
  0x67   :  { %756 = vmatprep.subr.bf16.mxu0 %v2013_v0  ;;  %1761 = vmatprep.subr.bf16.mxu1 %v2013_v0 }
  0x6a   :  { %757 = vmatpush1.bf16.msra.mxu0 %v1804_v15  ;;  %1777 = vmatpush1.bf16.msra.mxu1 %v1804_v15  ;;  %v1890_v15 = vld [vmem:[#allocation3 + $0x138] ss:$12 sps:$4 sm:$0xff]  }
  0x6b   :  { %758 = vmatprep.subr.bf16.mxu0 %v2013_v0  ;;  %1762 = vmatprep.subr.bf16.mxu1 %v2013_v0 }
  0x6e   :  { %759 = vmatpush1.bf16.msra.mxu0 %v1805_v16  ;;  %1778 = vmatpush1.bf16.msra.mxu1 %v1805_v16  ;;  %v1891_v16 = vld [vmem:[#allocation3 + $0x170] ss:$12 sps:$4 sm:$0xff]  }
  0x6f   :  { %760 = vmatprep.subr.bf16.mxu0 %v2013_v0  ;;  %1763 = vmatprep.subr.bf16.mxu1 %v2013_v0 }
  0x72   :  { %761 = vmatpush1.bf16.msra.mxu0 %v1806_v17  ;;  %1779 = vmatpush1.bf16.msra.mxu1 %v1806_v17  ;;  %v1892_v17 = vld [vmem:[#allocation3 + $0x154] ss:$12 sps:$4 sm:$0xff]  }
  0x73   :  { %762 = vmatprep.subr.bf16.mxu0 %v2013_v0  ;;  %1764 = vmatprep.subr.bf16.mxu1 %v2013_v0  ;;  %v1871_v0 = vld [vmem:[#allocation3 + $0xb0] ss:$12 sps:$4 sm:$0xff]  }
  0x76   :  { %763 = vmatpush1.bf16.msra.mxu0 %v1807_v18  ;;  %1780 = vmatpush1.bf16.msra.mxu1 %v1807_v18  ;;  %v1894_v18 = vld [vmem:[#allocation3 + $0x188] ss:$12 sps:$4 sm:$0xff]  }
  0x77   :  { %1685 = vmatprep.subr.bf16.mxu1 %v1814_v20 }
  0x79   :  { %765 = vmatmul.mubr.bf16.vlgmr.msra.gmra.mrb[0].mxu0 %v1808_v19  ;;  %909 = vmatmul.mubr.bf16.vlgmr.msra.gmra.mrb[0].mxu1 %v1811_v21  ;;  %v1895_v19 = vld [vmem:[#allocation3 + $0x150] ss:$12 sps:$4 sm:$0xff]   ;;  %v1897_v21 = vld [vmem:[#allocation3 + $0x16c] ss:$12 sps:$4 sm:$0xff]  }
  0x7a   :  { %1686 = vmatpush3.bf16.msra.mxu1 %v1814_v20  ;;  %772 = vmatprep.mubr.bf16.mxu0 %v1816_v23  ;;  %v1896_v20 = vld [vmem:[#allocation3 + $0x1a0] ss:$12 sps:$4 sm:$0xff]   ;;  %v1900_v23 = vld [vmem:[#allocation3 + $0x168] ss:$12 sps:$4 sm:$0xff]  }
  0x7b   :  { %1687 = vmatprep.subr.bf16.mxu1 %v1815_v22  ;;  %916 = vmatprep.mubr.bf16.mxu1 %v1818_v24  ;;  %v1901_v24 = vld [vmem:[#allocation3 + $0x1d0] ss:$12 sps:$4 sm:$0xff]  }
  0x7e   :  { %1688 = vmatpush3.bf16.msra.mxu1 %v1815_v22  ;;  %v1899_v22 = vld [vmem:[#allocation3 + $0x1b8] ss:$12 sps:$4 sm:$0xff]  }
  0x7f   :  { %1689 = vmatprep.subr.bf16.mxu1 %v1822_v25 }
  0x81   :  { %773 = vmatmul.mubr.bf16.gmra.mrb[4].mxu0 %v1820_v26  ;;  %917 = vmatmul.mubr.bf16.gmra.mrb[4].mxu1 %v1821_v27  ;;  %v1904_v26 = vld [vmem:[#allocation3 + $0x1e8] ss:$12 sps:$4 sm:$0xff]   ;;  %v1905_v27 = vld [vmem:[#allocation3 + $0x180] ss:$12 sps:$4 sm:$0xff]  }
  0x82   :  { %1690 = vmatpush3.bf16.msra.mxu1 %v1822_v25  ;;  %780 = vmatprep.mubr.bf16.mxu0 %v1823_v28  ;;  %v1902_v25 = vld [vmem:[#allocation3 + $0x184] ss:$12 sps:$4 sm:$0xff]   ;;  %v1906_v28 = vld [vmem:[#allocation3 + $0x200] ss:$12 sps:$4 sm:$0xff]  }
  0x83   :  { %924 = vmatprep.mubr.bf16.mxu1 %v1825_v29  ;;  %1691 = vmatprep.subr.bf16.mxu1 %v1829_v30  ;;  %v1907_v29 = vld [vmem:[#allocation3 + $0x19c] ss:$12 sps:$4 sm:$0xff]  }
  0x86   :  { %1692 = vmatpush3.bf16.msra.mxu1 %v1829_v30  ;;  %v1909_v30 = vld [vmem:[#allocation3 + $0x218] ss:$12 sps:$4 sm:$0xff]  }
  0x87   :  { %1693 = vmatprep.subr.bf16.mxu1 %v1836_v31 }
  0x89   :  { %781 = vmatmul.mubr.bf16.gmra.mrb[8].mxu0 %v1827_v32  ;;  %925 = vmatmul.mubr.bf16.gmra.mrb[8].mxu1 %v1828_v33  ;;  %v1911_v32 = vld [vmem:[#allocation3 + $0x230] ss:$12 sps:$4 sm:$0xff]  }
  0x8a   :  { %788 = vmatprep.mubr.bf16.mxu0 %v1830_v34  ;;  %932 = vmatprep.mubr.bf16.mxu1 %v1832_v35 }
  0x8b   :  { %1694 = vmatpush3.bf16.msra.mxu1 %v1836_v31  ;;  %v1910_v31 = vld [vmem:[#allocation3 + $0x198] ss:$12 sps:$4 sm:$0xff]  }
  0x8c   :  { %1695 = vmatprep.subr.bf16.mxu1 %v1837_v36 }
  0x8f   :  { %1696 = vmatpush3.bf16.msra.mxu1 %v1837_v36 }
  0x90   :  { %1697 = vmatprep.subr.bf16.mxu1 %v1844_v37 }
  0x91   :  { %789 = vmatmul.mubr.bf16.gmra.mrb[12].mxu0 %v1834_v38  ;;  %933 = vmatmul.mubr.bf16.gmra.mrb[12].mxu1 %v1835_v39 }
  0x92   :  { %796 = vmatprep.mubr.bf16.mxu0 %v1838_v40  ;;  %940 = vmatprep.mubr.bf16.mxu1 %v1840_v41 }
  0x93   :  { %1698 = vmatpush3.bf16.msra.mxu1 %v1844_v37 }
  0x94   :  { %1699 = vmatprep.subr.bf16.mxu1 %v1851_v42 }
  0x97   :  { %1700 = vmatpush3.bf16.msra.mxu1 %v1851_v42 }
  0x99   :  { %797 = vmatmul.mubr.bf16.gmra.mrb[16].mxu0 %v1842_v43  ;;  %941 = vmatmul.mubr.bf16.gmra.mrb[16].mxu1 %v1843_v44 }
  0x9a   :  { %804 = vmatprep.mubr.bf16.mxu0 %v1845_v45  ;;  %948 = vmatprep.mubr.bf16.mxu1 %v1847_v46 }
  0xa1   :  { %805 = vmatmul.mubr.bf16.gmra.mrb[20].mxu0 %v1849_v47  ;;  %949 = vmatmul.mubr.bf16.gmra.mrb[20].mxu1 %v1850_v48 }
  0xa2   :  { %812 = vmatprep.mubr.bf16.mxu0 %v1852_v49  ;;  %1701 = vmatprep.mubr.bf16.mxu1 %v1854_v50 }
  0xa9   :  { %813 = vmatmul.mubr.bf16.gmra.mrb[24].mxu0 %v1855_v51  ;;  %1702 = vmatmul.mubr.bf16.vlgmr.msra.gmra.mrb[24].mxu1 %v1856_v52 }
  0xaa   :  { %820 = vmatprep.mubr.bf16.mxu0 %v1857_v53  ;;  %1705 = vmatprep.mubr.bf16.mxu1 %v1859_v54 }
  0xb1   :  { %821 = vmatmul.mubr.bf16.gmra.mrb[28].mxu0 %v1860_v55  ;;  %1706 = vmatmul.mubr.bf16.gmra.mrb[28].mxu1 %v1861_v56 }
  0xb2   :  { %828 = vmatprep.mubr.bf16.mxu0 %v1862_v57  ;;  %1709 = vmatprep.mubr.bf16.mxu1 %v1864_v58 }
  0xb9   :  { %829 = vmatmul.mubr.bf16.gmra.mrb[32].mxu0 %v1865_v59  ;;  %1710 = vmatmul.mubr.bf16.gmra.mrb[32].mxu1 %v1866_v60 }
  0xba   :  { %836 = vmatprep.mubr.bf16.mxu0 %v1867_v61  ;;  %1713 = vmatprep.mubr.bf16.mxu1 %v1869_v62 }
  0xc1   :  { %837 = vmatmul.mubr.bf16.gmra.mrb[36].mxu0 %v1870_v63  ;;  %1714 = vmatmul.mubr.bf16.gmra.mrb[36].mxu1 %v1871_v0 }
  0xc2   :  { %844 = vmatprep.mubr.bf16.mxu0 %v1872_v1  ;;  %1717 = vmatprep.mubr.bf16.mxu1 %v1874_v2 }
  0xc9   :  { %845 = vmatmul.mubr.bf16.gmra.mrb[40].mxu0 %v1875_v3  ;;  %1718 = vmatmul.mubr.bf16.gmra.mrb[40].mxu1 %v1876_v4 }
  0xca   :  { %852 = vmatprep.mubr.bf16.mxu0 %v1877_v5  ;;  %1721 = vmatprep.mubr.bf16.mxu1 %v1879_v6 }
  0xd1   :  { %853 = vmatmul.mubr.bf16.gmra.mrb[44].mxu0 %v1880_v7  ;;  %1722 = vmatmul.mubr.bf16.gmra.mrb[44].mxu1 %v1881_v8 }
  0xd2   :  { %860 = vmatprep.mubr.bf16.mxu0 %v1882_v9  ;;  %1725 = vmatprep.mubr.bf16.mxu1 %v1884_v10 }
  0xd9   :  { %861 = vmatmul.mubr.bf16.gmra.mrb[48].mxu0 %v1885_v11  ;;  %1726 = vmatmul.mubr.bf16.gmra.mrb[48].mxu1 %v1886_v12 }
  0xda   :  { %868 = vmatprep.mubr.bf16.mxu0 %v1887_v13  ;;  %1729 = vmatprep.mubr.bf16.mxu1 %v1889_v14 }
  0xe1   :  { %869 = vmatmul.mubr.bf16.gmra.mrb[52].mxu0 %v1890_v15  ;;  %1730 = vmatmul.mubr.bf16.gmra.mrb[52].mxu1 %v1891_v16 }
  0xe2   :  { %876 = vmatprep.mubr.bf16.mxu0 %v1892_v17  ;;  %1733 = vmatprep.mubr.bf16.mxu1 %v1894_v18 }
  0xe9   :  { %877 = vmatmul.mubr.bf16.gmra.mrb[56].mxu0 %v1895_v19  ;;  %1734 = vmatmul.mubr.bf16.gmra.mrb[56].mxu1 %v1896_v20  ;;  %v2133_v19 = vld [vmem:[#allocation8] ss:$0 sm:$0xff] }
  0xea   :  { %884 = vmatprep.mubr.bf16.mxu0 %v1897_v21  ;;  %1737 = vmatprep.mubr.bf16.mxu1 %v1899_v22 }
  0xf1   :  { %885 = vmatmul.mubr.bf16.gmra.mrb[60].mxu0 %v1900_v23  ;;  %1738 = vmatmul.mubr.bf16.gmra.mrb[60].mxu1 %v1901_v24 }
  0xf2   :  { %892 = vmatprep.mubr.bf16.mxu0 %v1902_v25  ;;  %1741 = vmatprep.mubr.bf16.mxu1 %v1904_v26 }
  0xf9   :  { %893 = vmatmul.mubr.bf16.gmra.mrb[64].mxu0 %v1905_v27  ;;  %1742 = vmatmul.mubr.bf16.gmra.mrb[64].mxu1 %v1906_v28 }
  0xfa   :  { %900 = vmatprep.mubr.bf16.mxu0 %v1907_v29  ;;  %1745 = vmatprep.mubr.bf16.mxu1 %v1909_v30 }
 0x101   :  { %901 = vmatmul.mubr.bf16.gmra.mrb[68].mxu0 %v1910_v31  ;;  %1746 = vmatmul.mubr.bf16.gmra.mrb[68].mxu1 %v1911_v32 }
 0x14c   :  { %v766_v33 = vpop.f32.mrb[0].mxu0  ;;  %v2105_v34 = vpop.f32.mrb[0].mxu1 }
 0x14d   :  { %v768_v35 = vpop.f32.mrb[1].mxu0  ;;  %v912_v36 = vpop.f32.mrb[1].mxu1 }
 0x14e   :  { %v769_v37 = vpop.f32.mrb[2].mxu0  ;;  %v2107_v38 = vpop.f32.mrb[2].mxu1 }
 0x14f   :  { %v771_v39 = vpop.f32.mrb[3].mxu0  ;;  %v915_v40 = vpop.f32.mrb[3].mxu1 }
 0x154   :  { %v774_v41 = vpop.f32.mrb[4].mxu0  ;;  %v2109_v42 = vpop.f32.mrb[4].mxu1 }
 0x155   :  { %v776_v43 = vpop.f32.mrb[5].mxu0  ;;  %v920_v44 = vpop.f32.mrb[5].mxu1 }
 0x156   :  { %v777_v45 = vpop.f32.mrb[6].mxu0  ;;  %v2111_v46 = vpop.f32.mrb[6].mxu1 }
 0x157   :  { %v779_v47 = vpop.f32.mrb[7].mxu0  ;;  %v923_v48 = vpop.f32.mrb[7].mxu1 }
 0x15c   :  { %v782_v49 = vpop.f32.mrb[8].mxu0  ;;  %v2113_v50 = vpop.f32.mrb[8].mxu1 }
 0x15d   :  { %v784_v51 = vpop.f32.mrb[9].mxu0  ;;  %v928_v52 = vpop.f32.mrb[9].mxu1 }
 0x15e   :  { %v785_v53 = vpop.f32.mrb[10].mxu0  ;;  %v2115_v54 = vpop.f32.mrb[10].mxu1 }
 0x15f   :  { %v787_v55 = vpop.f32.mrb[11].mxu0  ;;  %v931_v56 = vpop.f32.mrb[11].mxu1 }
 0x164   :  { %v790_v57 = vpop.f32.mrb[12].mxu0  ;;  %v2117_v58 = vpop.f32.mrb[12].mxu1 }
 0x165   :  { %v792_v59 = vpop.f32.mrb[13].mxu0  ;;  %v936_v60 = vpop.f32.mrb[13].mxu1 }
 0x166   :  { %v793_v61 = vpop.f32.mrb[14].mxu0  ;;  %v2119_v62 = vpop.f32.mrb[14].mxu1 }
 0x167   :  { %v795_v63 = vpop.f32.mrb[15].mxu0  ;;  %v939_v0 = vpop.f32.mrb[15].mxu1 }
 0x16c   :  { %v798_v1 = vpop.f32.mrb[16].mxu0  ;;  %v2121_v2 = vpop.f32.mrb[16].mxu1 }
 0x16d   :  { %v800_v3 = vpop.f32.mrb[17].mxu0  ;;  %v944_v4 = vpop.f32.mrb[17].mxu1 }
 0x16e   :  { %v2123_v5 = vpop.f32.mrb[18].mxu0  ;;  %v2125_v6 = vpop.f32.mrb[18].mxu1 }
 0x16f   :  { %v803_v7 = vpop.f32.mrb[19].mxu0  ;;  %v947_v8 = vpop.f32.mrb[19].mxu1 }
 0x174   :  { %v806_v9 = vpop.f32.mrb[20].mxu0  ;;  %v2127_v10 = vpop.f32.mrb[20].mxu1 }
 0x175   :  { %v808_v11 = vpop.f32.mrb[21].mxu0  ;;  %v952_v12 = vpop.f32.mrb[21].mxu1 }
 0x176   :  { %v809_v13 = vpop.f32.mrb[22].mxu0  ;;  %v2129_v14 = vpop.f32.mrb[22].mxu1 }
 0x177   :  { %v811_v15 = vpop.f32.mrb[23].mxu0  ;;  %v955_v16 = vpop.f32.mrb[23].mxu1 }
 0x17c   :  { %v2131_v17 = vpop.f32.mrb[24].mxu0  ;;  %v1703_v18 = vpop.f32.mrb[24].mxu1 }
 0x17d   :  { %v1000_v20 = vadd.f32 %v1703_v18, %v774_v41  ;;  %v816_v21 = vpop.f32.mrb[25].mxu0  ;;  %v991_v22 = vpop.f32.mrb[25].mxu1 }
 0x17e   :  { %v992_v23 = vadd.f32 %v991_v22, %v766_v33  ;;  %v2135_v24 = vpop.f32.mrb[26].mxu0  ;;  %v1704_v25 = vpop.f32.mrb[26].mxu1 }
 0x17f   :  { %v1442_v26 = vadd.f32 %v2133_v19, %v1000_v20  ;;  %v1003_v27 = vadd.f32 %v1704_v25, %v777_v45  ;;  %v819_v28 = vpop.f32.mrb[27].mxu0  ;;  %v994_v29 = vpop.f32.mrb[27].mxu1 }
 0x180   :  { %v1440_v30 = vadd.f32 %v2133_v19, %v992_v23  ;;  %v995_v31 = vadd.f32 %v994_v29, %v769_v37 }
 0x181   :  { %1490 = vst [vmem:[#allocation9 + $0x10] sm:$0xff] %v1442_v26  ;;  %v1443_v32 = vadd.f32 %v2133_v19, %v1003_v27 }
 0x182   :  { %1488 = vst [vmem:[#allocation9] sm:$0xff] %v1440_v30  ;;  %v1441_v35 = vadd.f32 %v2133_v19, %v995_v31 }
 0x183   :  { %1491 = vst [vmem:[#allocation9 + $0x18] sm:$0xff] %v1443_v32 }
 0x184   :  { %1489 = vst [vmem:[#allocation9 + $0x8] sm:$0xff] %v1441_v35  ;;  %v822_v33 = vpop.f32.mrb[28].mxu0  ;;  %v1707_v36 = vpop.f32.mrb[28].mxu1 }
 0x185   :  { %v1016_v39 = vadd.f32 %v1707_v36, %v790_v57  ;;  %v824_v40 = vpop.f32.mrb[29].mxu0  ;;  %v1007_v41 = vpop.f32.mrb[29].mxu1 }
 0x186   :  { %v1008_v43 = vadd.f32 %v1007_v41, %v782_v49  ;;  %v825_v44 = vpop.f32.mrb[30].mxu0  ;;  %v1708_v45 = vpop.f32.mrb[30].mxu1 }
 0x187   :  { %v1446_v47 = vadd.f32 %v2133_v19, %v1016_v39  ;;  %v1019_v48 = vadd.f32 %v1708_v45, %v793_v61  ;;  %v827_v37 = vpop.f32.mrb[31].mxu0  ;;  %v1010_v51 = vpop.f32.mrb[31].mxu1 }
 0x188   :  { %v1444_v52 = vadd.f32 %v2133_v19, %v1008_v43  ;;  %v1011_v55 = vadd.f32 %v1010_v51, %v785_v53 }
 0x189   :  { %1494 = vst [vmem:[#allocation9 + $0x30] sm:$0xff] %v1446_v47  ;;  %v1447_v56 = vadd.f32 %v2133_v19, %v1019_v48 }
 0x18a   :  { %1492 = vst [vmem:[#allocation9 + $0x20] sm:$0xff] %v1444_v52  ;;  %v1445_v59 = vadd.f32 %v2133_v19, %v1011_v55 }
 0x18b   :  { %1495 = vst [vmem:[#allocation9 + $0x38] sm:$0xff] %v1447_v56 }
 0x18c   :  { %1493 = vst [vmem:[#allocation9 + $0x28] sm:$0xff] %v1445_v59  ;;  %v830_v57 = vpop.f32.mrb[32].mxu0  ;;  %v1711_v49 = vpop.f32.mrb[32].mxu1 }
 0x18d   :  { %v1032_v60 = vadd.f32 %v1711_v49, %v806_v9  ;;  %v832_v63 = vpop.f32.mrb[33].mxu0  ;;  %v1023_v0 = vpop.f32.mrb[33].mxu1 }
 0x18e   :  { %v1024_v3 = vadd.f32 %v1023_v0, %v798_v1  ;;  %v833_v61 = vpop.f32.mrb[34].mxu0  ;;  %v1712_v4 = vpop.f32.mrb[34].mxu1 }
 0x18f   :  { %v1450_v7 = vadd.f32 %v2133_v19, %v1032_v60  ;;  %v1035_v8 = vadd.f32 %v1712_v4, %v809_v13  ;;  %v835_v53 = vpop.f32.mrb[35].mxu0  ;;  %v1026_v11 = vpop.f32.mrb[35].mxu1 }
 0x190   :  { %v1448_v12 = vadd.f32 %v2133_v19, %v1024_v3  ;;  %v1027_v15 = vadd.f32 %v1026_v11, %v2123_v5 }
 0x191   :  { %1498 = vst [vmem:[#allocation9 + $0x50] sm:$0xff] %v1450_v7  ;;  %v1451_v16 = vadd.f32 %v2133_v19, %v1035_v8 }
 0x192   :  { %1496 = vst [vmem:[#allocation9 + $0x40] sm:$0xff] %v1448_v12  ;;  %v1449_v9 = vadd.f32 %v2133_v19, %v1027_v15 }
 0x193   :  { %1499 = vst [vmem:[#allocation9 + $0x58] sm:$0xff] %v1451_v16 }
 0x194   :  { %1497 = vst [vmem:[#allocation9 + $0x48] sm:$0xff] %v1449_v9  ;;  %v838_v1 = vpop.f32.mrb[36].mxu0  ;;  %v1715_v18 = vpop.f32.mrb[36].mxu1 }
 0x195   :  { %v1048_v20 = vadd.f32 %v1715_v18, %v822_v33  ;;  %v840_v21 = vpop.f32.mrb[37].mxu0  ;;  %v1039_v22 = vpop.f32.mrb[37].mxu1 }
 0x196   :  { %v1040_v13 = vadd.f32 %v1039_v22, %v2131_v17  ;;  %v841_v23 = vpop.f32.mrb[38].mxu0  ;;  %v1716_v25 = vpop.f32.mrb[38].mxu1 }
 0x197   :  { %v1454_v26 = vadd.f32 %v2133_v19, %v1048_v20  ;;  %v1051_v5 = vadd.f32 %v1716_v25, %v825_v44  ;;  %v843_v27 = vpop.f32.mrb[39].mxu0  ;;  %v1042_v28 = vpop.f32.mrb[39].mxu1 }
 0x198   :  { %v1452_v29 = vadd.f32 %v2133_v19, %v1040_v13  ;;  %v1043_v30 = vadd.f32 %v1042_v28, %v2135_v24 }
 0x199   :  { %1502 = vst [vmem:[#allocation9 + $0x70] sm:$0xff] %v1454_v26  ;;  %v1455_v31 = vadd.f32 %v2133_v19, %v1051_v5 }
 0x19a   :  { %1500 = vst [vmem:[#allocation9 + $0x60] sm:$0xff] %v1452_v29  ;;  %v1453_v32 = vadd.f32 %v2133_v19, %v1043_v30 }
 0x19b   :  { %1503 = vst [vmem:[#allocation9 + $0x78] sm:$0xff] %v1455_v31 }
 0x19c   :  { %1501 = vst [vmem:[#allocation9 + $0x68] sm:$0xff] %v1453_v32  ;;  %v846_v17 = vpop.f32.mrb[40].mxu0  ;;  %v1719_v35 = vpop.f32.mrb[40].mxu1 }
 0x19d   :  { %v1064_v33 = vadd.f32 %v1719_v35, %v838_v1  ;;  %v848_v36 = vpop.f32.mrb[41].mxu0  ;;  %v1055_v39 = vpop.f32.mrb[41].mxu1 }
 0x19e   :  { %v1056_v40 = vadd.f32 %v1055_v39, %v830_v57  ;;  %v849_v41 = vpop.f32.mrb[42].mxu0  ;;  %v1720_v43 = vpop.f32.mrb[42].mxu1 }
 0x19f   :  { %v1458_v44 = vadd.f32 %v2133_v19, %v1064_v33  ;;  %v1067_v45 = vadd.f32 %v1720_v43, %v841_v23  ;;  %v851_v24 = vpop.f32.mrb[43].mxu0  ;;  %v1058_v47 = vpop.f32.mrb[43].mxu1 }
 0x1a0   :  { %v1456_v48 = vadd.f32 %v2133_v19, %v1056_v40  ;;  %v1059_v37 = vadd.f32 %v1058_v47, %v833_v61 }
 0x1a1   :  { %1506 = vst [vmem:[#allocation9 + $0x90] sm:$0xff] %v1458_v44  ;;  %v1459_v51 = vadd.f32 %v2133_v19, %v1067_v45 }
 0x1a2   :  { %1504 = vst [vmem:[#allocation9 + $0x80] sm:$0xff] %v1456_v48  ;;  %v1457_v52 = vadd.f32 %v2133_v19, %v1059_v37 }
 0x1a3   :  { %1507 = vst [vmem:[#allocation9 + $0x98] sm:$0xff] %v1459_v51 }
 0x1a4   :  { %1505 = vst [vmem:[#allocation9 + $0x88] sm:$0xff] %v1457_v52  ;;  %v854_v55 = vpop.f32.mrb[44].mxu0  ;;  %v1723_v56 = vpop.f32.mrb[44].mxu1 }
 0x1a5   :  { %v1080_v59 = vadd.f32 %v1723_v56, %v854_v55  ;;  %v856_v57 = vpop.f32.mrb[45].mxu0  ;;  %v1071_v49 = vpop.f32.mrb[45].mxu1 }
 0x1a6   :  { %v1072_v60 = vadd.f32 %v1071_v49, %v846_v17  ;;  %v857_v63 = vpop.f32.mrb[46].mxu0  ;;  %v1724_v0 = vpop.f32.mrb[46].mxu1 }
 0x1a7   :  { %v1462_v3 = vadd.f32 %v2133_v19, %v1080_v59  ;;  %v1083_v4 = vadd.f32 %v1724_v0, %v857_v63  ;;  %v859_v61 = vpop.f32.mrb[47].mxu0  ;;  %v1074_v7 = vpop.f32.mrb[47].mxu1 }
 0x1a8   :  { %v1460_v8 = vadd.f32 %v2133_v19, %v1072_v60  ;;  %v1075_v53 = vadd.f32 %v1074_v7, %v849_v41 }
 0x1a9   :  { %1510 = vst [vmem:[#allocation9 + $0xb0] sm:$0xff] %v1462_v3  ;;  %v1463_v11 = vadd.f32 %v2133_v19, %v1083_v4 }
 0x1aa   :  { %1508 = vst [vmem:[#allocation9 + $0xa0] sm:$0xff] %v1460_v8  ;;  %v1461_v12 = vadd.f32 %v2133_v19, %v1075_v53 }
 0x1ab   :  { %1511 = vst [vmem:[#allocation9 + $0xb8] sm:$0xff] %v1463_v11 }
 0x1ac   :  { %1509 = vst [vmem:[#allocation9 + $0xa8] sm:$0xff] %v1461_v12  ;;  %v862_v15 = vpop.f32.mrb[48].mxu0  ;;  %v1727_v16 = vpop.f32.mrb[48].mxu1 }
 0x1ad   :  { %v864_v9 = vpop.f32.mrb[49].mxu0  ;;  %v1087_v1 = vpop.f32.mrb[49].mxu1 }
 0x1ae   :  { %v1088_v18 = vadd.f32 %v1087_v1, %v862_v15  ;;  %v865_v20 = vpop.f32.mrb[50].mxu0  ;;  %v1728_v21 = vpop.f32.mrb[50].mxu1 }
 0x1af   :  { %v867_v22 = vpop.f32.mrb[51].mxu0  ;;  %v1090_v13 = vpop.f32.mrb[51].mxu1 }
 0x1b0   :  { %v1464_v23 = vadd.f32 %v2133_v19, %v1088_v18  ;;  %v1091_v25 = vadd.f32 %v1090_v13, %v865_v20 }
 0x1b2   :  { %1512 = vst [vmem:[#allocation9 + $0xc0] sm:$0xff] %v1464_v23  ;;  %v1465_v26 = vadd.f32 %v2133_v19, %v1091_v25 }
 0x1b4   :  { %1513 = vst [vmem:[#allocation9 + $0xc8] sm:$0xff] %v1465_v26  ;;  %v870_v5 = vpop.f32.mrb[52].mxu0  ;;  %v1731_v27 = vpop.f32.mrb[52].mxu1 }
 0x1b5   :  { %v1096_v28 = vadd.f32 %v1727_v16, %v870_v5  ;;  %v872_v29 = vpop.f32.mrb[53].mxu0  ;;  %v1103_v30 = vpop.f32.mrb[53].mxu1 }
 0x1b6   :  { %v873_v31 = vpop.f32.mrb[54].mxu0  ;;  %v1732_v32 = vpop.f32.mrb[54].mxu1 }
 0x1b7   :  { %v1466_v17 = vadd.f32 %v2133_v19, %v1096_v28  ;;  %v1099_v35 = vadd.f32 %v1728_v21, %v873_v31  ;;  %v875_v33 = vpop.f32.mrb[55].mxu0  ;;  %v1106_v36 = vpop.f32.mrb[55].mxu1 }
 0x1b9   :  { %1514 = vst [vmem:[#allocation9 + $0xd0] sm:$0xff] %v1466_v17  ;;  %v1467_v39 = vadd.f32 %v2133_v19, %v1099_v35 }
 0x1bb   :  { %1515 = vst [vmem:[#allocation9 + $0xd8] sm:$0xff] %v1467_v39 }
 0x1bc   :  { %v878_v40 = vpop.f32.mrb[56].mxu0  ;;  %v2168_v41 = vpop.f32.mrb[56].mxu1 }
 0x1bd   :  { %v1104_v43 = vadd.f32 %v1103_v30, %v878_v40  ;;  %v880_v44 = vpop.f32.mrb[57].mxu0  ;;  %v1119_v45 = vpop.f32.mrb[57].mxu1 }
 0x1be   :  { %v881_v24 = vpop.f32.mrb[58].mxu0  ;;  %v2170_v47 = vpop.f32.mrb[58].mxu1 }
 0x1bf   :  { %v1468_v48 = vadd.f32 %v2133_v19, %v1104_v43  ;;  %v1107_v37 = vadd.f32 %v1106_v36, %v881_v24  ;;  %v883_v51 = vpop.f32.mrb[59].mxu0  ;;  %v1122_v52 = vpop.f32.mrb[59].mxu1 }
 0x1c1   :  { %1516 = vst [vmem:[#allocation9 + $0xe0] sm:$0xff] %v1468_v48  ;;  %v1469_v55 = vadd.f32 %v2133_v19, %v1107_v37 }
 0x1c3   :  { %1517 = vst [vmem:[#allocation9 + $0xe8] sm:$0xff] %v1469_v55 }
 0x1c4   :  { %v886_v56 = vpop.f32.mrb[60].mxu0  ;;  %v1739_v59 = vpop.f32.mrb[60].mxu1 }
 0x1c5   :  { %v1112_v57 = vadd.f32 %v1731_v27, %v886_v56  ;;  %v1144_v49 = vadd.f32 %v1739_v59, %v2109_v42  ;;  %v888_v60 = vpop.f32.mrb[61].mxu0  ;;  %v1135_v63 = vpop.f32.mrb[61].mxu1 }
 0x1c6   :  { %v1136_v0 = vadd.f32 %v1135_v63, %v2105_v34  ;;  %v889_v3 = vpop.f32.mrb[62].mxu0  ;;  %v1740_v4 = vpop.f32.mrb[62].mxu1 }
 0x1c7   :  { %v1470_v61 = vadd.f32 %v2133_v19, %v1112_v57  ;;  %v1478_v7 = vadd.f32 %v2133_v19, %v1144_v49  ;;  %v1115_v8 = vadd.f32 %v1732_v32, %v889_v3  ;;  %v1147_v53 = vadd.f32 %v1740_v4, %v2111_v46  ;;  %v891_v11 = vpop.f32.mrb[63].mxu0  ;;  %v1138_v12 = vpop.f32.mrb[63].mxu1 }
 0x1c8   :  { %v1476_v15 = vadd.f32 %v2133_v19, %v1136_v0  ;;  %v1139_v16 = vadd.f32 %v1138_v12, %v2107_v38 }
 0x1c9   :  { %1518 = vst [vmem:[#allocation9 + $0xf0] sm:$0xff] %v1470_v61  ;;  %1526 = vst [vmem:[#allocation9 + $0x130] sm:$0xff] %v1478_v7  ;;  %v1471_v42 = vadd.f32 %v2133_v19, %v1115_v8  ;;  %v1479_v34 = vadd.f32 %v2133_v19, %v1147_v53 }
 0x1ca   :  { %1524 = vst [vmem:[#allocation9 + $0x120] sm:$0xff] %v1476_v15  ;;  %v1477_v9 = vadd.f32 %v2133_v19, %v1139_v16 }
 0x1cb   :  { %1519 = vst [vmem:[#allocation9 + $0xf8] sm:$0xff] %v1471_v42  ;;  %1527 = vst [vmem:[#allocation9 + $0x138] sm:$0xff] %v1479_v34 }
 0x1cc   :  { %1525 = vst [vmem:[#allocation9 + $0x128] sm:$0xff] %v1477_v9  ;;  %v894_v1 = vpop.f32.mrb[64].mxu0  ;;  %v1743_v46 = vpop.f32.mrb[64].mxu1 }
 0x1cd   :  { %v1120_v18 = vadd.f32 %v1119_v45, %v894_v1  ;;  %v1160_v20 = vadd.f32 %v1743_v46, %v2117_v58  ;;  %v896_v21 = vpop.f32.mrb[65].mxu0  ;;  %v1151_v22 = vpop.f32.mrb[65].mxu1 }
 0x1ce   :  { %v1152_v38 = vadd.f32 %v1151_v22, %v2113_v50  ;;  %v897_v13 = vpop.f32.mrb[66].mxu0  ;;  %v1744_v23 = vpop.f32.mrb[66].mxu1 }
 0x1cf   :  { %v1472_v25 = vadd.f32 %v2133_v19, %v1120_v18  ;;  %v1482_v26 = vadd.f32 %v2133_v19, %v1160_v20  ;;  %v1123_v5 = vadd.f32 %v1122_v52, %v897_v13  ;;  %v1163_v27 = vadd.f32 %v1744_v23, %v2119_v62  ;;  %v899_v28 = vpop.f32.mrb[67].mxu0  ;;  %v1154_v29 = vpop.f32.mrb[67].mxu1 }
 0x1d0   :  { %v1480_v30 = vadd.f32 %v2133_v19, %v1152_v38  ;;  %v1155_v31 = vadd.f32 %v1154_v29, %v2115_v54 }
 0x1d1   :  { %1520 = vst [vmem:[#allocation9 + $0x100] sm:$0xff] %v1472_v25  ;;  %1530 = vst [vmem:[#allocation9 + $0x150] sm:$0xff] %v1482_v26  ;;  %v1473_v58 = vadd.f32 %v2133_v19, %v1123_v5  ;;  %v1483_v50 = vadd.f32 %v2133_v19, %v1163_v27 }
 0x1d2   :  { %1528 = vst [vmem:[#allocation9 + $0x140] sm:$0xff] %v1480_v30  ;;  %v1481_v32 = vadd.f32 %v2133_v19, %v1155_v31 }
 0x1d3   :  { %1521 = vst [vmem:[#allocation9 + $0x108] sm:$0xff] %v1473_v58  ;;  %1531 = vst [vmem:[#allocation9 + $0x158] sm:$0xff] %v1483_v50 }
 0x1d4   :  { %1529 = vst [vmem:[#allocation9 + $0x148] sm:$0xff] %v1481_v32  ;;  %v902_v17 = vpop.f32.mrb[68].mxu0  ;;  %v1747_v62 = vpop.f32.mrb[68].mxu1 }
 0x1d5   :  { %v1128_v35 = vadd.f32 %v2168_v41, %v902_v17  ;;  %v1176_v33 = vadd.f32 %v1747_v62, %v2127_v10  ;;  %v904_v36 = vpop.f32.mrb[69].mxu0  ;;  %v1167_v54 = vpop.f32.mrb[69].mxu1 }
 0x1d6   :  { %v1168_v39 = vadd.f32 %v1167_v54, %v2121_v2  ;;  %v905_v40 = vpop.f32.mrb[70].mxu0  ;;  %v1748_v43 = vpop.f32.mrb[70].mxu1 }
 0x1d7   :  { %v1474_v44 = vadd.f32 %v2133_v19, %v1128_v35  ;;  %v1486_v45 = vadd.f32 %v2133_v19, %v1176_v33  ;;  %v1131_v24 = vadd.f32 %v2170_v47, %v905_v40  ;;  %v1179_v48 = vadd.f32 %v1748_v43, %v2129_v14  ;;  %v907_v37 = vpop.f32.mrb[71].mxu0  ;;  %v1170_v41 = vpop.f32.mrb[71].mxu1 }
 0x1d8   :  { %v1484_v10 = vadd.f32 %v2133_v19, %v1168_v39  ;;  %v1171_v51 = vadd.f32 %v1170_v41, %v2125_v6 }
 0x1d9   :  { %1522 = vst [vmem:[#allocation9 + $0x110] sm:$0xff] %v1474_v44  ;;  %1534 = vst [vmem:[#allocation9 + $0x170] sm:$0xff] %v1486_v45  ;;  %v1475_v2 = vadd.f32 %v2133_v19, %v1131_v24  ;;  %v1487_v52 = vadd.f32 %v2133_v19, %v1179_v48 }
 0x1da   :  { %1532 = vst [vmem:[#allocation9 + $0x160] sm:$0xff] %v1484_v10  ;;  %v1485_v55 = vadd.f32 %v2133_v19, %v1171_v51 }
 0x1db   :  { %1523 = vst [vmem:[#allocation9 + $0x118] sm:$0xff] %v1475_v2  ;;  %1535 = vst [vmem:[#allocation9 + $0x178] sm:$0xff] %v1487_v52 }
 0x1dc   :  { %1533 = vst [vmem:[#allocation9 + $0x168] sm:$0xff] %v1485_v55 }
 0x1dd   :  { %1989 = shalt.err (!%p1986_p0)
}
 0x1de   :  { %s1990_s28 = scalar_lea.hbm %s2221_s3, 6144 }
 0x1df   :  { %p1991_p1 = scmp.ne.s32.totalorder %s2221_s3, %s1990_s28  ;;  %p1994_p2 = scmp.lt.u32.totalorder %s1990_s28, %s2221_s3 }
 0x1e1   :  { %p1996_p3 = pnand %p1994_p2, %p1991_p1 }
 0x1e3   :  { %1999 = shalt.err (!%p1996_p3)
}
 0x1e4   :  { %s2015_s6 = smov 128   ;;  %s2016_s7 = smov 8  }
 0x1e5   :  { %1547 = dma.vmem_to_hbm [thread:$0]  %s1542_s24, 6144, %s2221_s3, [#allocation5], %s2015_s6, %s2015_s6, %s2016_s7  }
 0x1e6   :  { %2004 = dma.done.wait [#allocation5], 6144  }
 0x1e7   :  { %2005 = vsyncadd [#allocation5], 4294961152 }
 0x1e8   :  { %1551 = vsyncpa [#allocation4], 1 }
 0x1e9   :  { %1552 = vsyncpa [#allocation7], 1 }
 0x1ea   :  { %1553 = vsyncpa [#allocation5], 1 }

</bundles_post_ra>
